<compile_context>
chip_gen: v7x
topology: tpu7x:2x2x1
jax: 0.10.0
libtpu: 0.0.40
codegen_flags: <defaults>
</compile_context>

<pallas_src>
import math
import functools

import jax
import jax.numpy as jnp
from jax.experimental import pallas as pl
from jax.experimental.pallas import tpu as pltpu


# ----------------------------------------------------------------------------
# Pallas kernel factory.
# ----------------------------------------------------------------------------
def _make_deconv_bn_relu_kernel(Hin, Win, Hout, Wout, Cin, Cout,
                                kh, kw, dilation, ph, pw):
    """Kernel operating on one NHWC image block per grid step."""

    def kernel(x_ref, w_ref, s_ref, b_ref, o_ref, xpad_ref):
        # x_ref   : (Hin,  Win,  Cin)   input block (native dtype)
        # w_ref   : (kh, kw, Cin, Cout) effective cross-correlation taps (f32)
        # s_ref   : (1, Cout)           fused BN scale
        # b_ref   : (1, Cout)           fused BN bias
        # o_ref   : (Hout, Wout, Cout)  output block
        # xpad_ref: (Hin+2ph, Win+2pw, Cin) f32 VMEM scratch (zero halo)

        # Fused zero-pad + cast to f32 inside VMEM (no extra HBM pass).
        xpad_ref[...] = jnp.zeros_like(xpad_ref)
        xpad_ref[ph:ph + Hin, pw:pw + Win, :] = x_ref[...].astype(jnp.float32)

        # Per-tap matmul over the channel dimension (MXU), accumulate in f32.
        acc = jnp.zeros((Hout * Wout, Cout), jnp.float32)
        for i in range(kh):              # static unroll: kh*kw taps
            for j in range(kw):
                xs = xpad_ref[i * dilation:i * dilation + Hout,
                              j * dilation:j * dilation + Wout, :]
                acc = acc + jnp.dot(xs.reshape(Hout * Wout, Cin),
                                    w_ref[i, j, :, :],
                                    preferred_element_type=jnp.float32)

        # Fused BatchNorm (eval mode) + ReLU, single dense store.
        y = jnp.maximum(acc * s_ref[...] + b_ref[...], 0.0)
        o_ref[...] = y.reshape(Hout, Wout, Cout).astype(o_ref.dtype)

    return kernel


# ----------------------------------------------------------------------------
# Wrapper: Deconv2dBlock forward (inference-mode BatchNorm).
# ----------------------------------------------------------------------------
def deconv2d_block(x, weight, gamma, beta, running_mean, running_var, *,
                   stride=1, padding=1, output_padding=0, dilation=1, eps=1e-5):
    """x: (N, Cin, H, W);  weight: ConvTranspose2d weight (Cin, Cout, kh, kw)."""
    N, Cin, H, W = x.shape
    Cin_w, Cout, kh, kw = weight.shape
    assert Cin == Cin_w, "in_channels mismatch"
    assert stride == 1 and output_padding == 0, "only stride=1 supported"

    # Stride-1 transposed conv == cross-correlation with flipped/transposed
    # weight and padding d*(k-1) - p.
    eq_ph = dilation * (kh - 1) - padding
    eq_pw = dilation * (kw - 1) - padding
    assert eq_ph >= 0 and eq_pw >= 0, "padding too large for simple equivalence"

    Hout = H - 2 * padding + dilation * (kh - 1)
    Wout = W - 2 * padding + dilation * (kw - 1)
    Hp, Wp = H + 2 * eq_ph, W + 2 * eq_pw

    # Effective taps: w_taps[i, j, ci, co] = weight[ci, co, kh-1-i, kw-1-j].
    w_taps = jnp.flip(weight, axis=(2, 3)).transpose(2, 3, 0, 1).astype(jnp.float32)

    # Fold eval-mode BatchNorm into per-channel scale / bias.
    scale = (gamma / jnp.sqrt(running_var + eps)).astype(jnp.float32)
    bias = (beta - running_mean * scale).astype(jnp.float32)
    scale2 = scale.reshape(1, Cout)
    bias2 = bias.reshape(1, Cout)

    # Channels-last for the kernel (channel contraction on the MXU,
    # lane-dense output stores for realistic Cout).
    x_nhwc = jnp.transpose(x, (0, 2, 3, 1))

    kernel = _make_deconv_bn_relu_kernel(H, W, Hout, Wout, Cin, Cout,
                                         kh, kw, dilation, eq_ph, eq_pw)

    out_nhwc = pl.pallas_call(
        kernel,
        out_shape=jax.ShapeDtypeStruct((N, Hout, Wout, Cout), x.dtype),
        grid=(N,),
        in_specs=[
            pl.BlockSpec((None, H, W, Cin), lambda n: (n, 0, 0, 0)),
            pl.BlockSpec((kh, kw, Cin, Cout), lambda n: (0, 0, 0, 0)),
            pl.BlockSpec((1, Cout), lambda n: (0, 0)),
            pl.BlockSpec((1, Cout), lambda n: (0, 0)),
        ],
        out_specs=pl.BlockSpec((None, Hout, Wout, Cout), lambda n: (n, 0, 0, 0)),
        scratch_shapes=[pltpu.VMEM((Hp, Wp, Cin), jnp.float32)],
        compiler_params=pltpu.CompilerParams(dimension_semantics=("parallel",)),
    )(x_nhwc, w_taps, scale2, bias2)

    return jnp.transpose(out_nhwc, (0, 3, 1, 2))


# ----------------------------------------------------------------------------
# Pure-JAX reference for verification.
# ----------------------------------------------------------------------------
def reference(x, weight, gamma, beta, running_mean, running_var, *,
              padding=1, dilation=1, eps=1e-5):
    Cin, Cout, kh, kw = weight.shape
    w_eff = jnp.flip(weight, axis=(2, 3)).transpose(1, 0, 2, 3)  # (Cout, Cin, kh, kw)
    eq_ph = dilation * (kh - 1) - padding
    eq_pw = dilation * (kw - 1) - padding
    y = jax.lax.conv_general_dilated(
        x.astype(jnp.float32), w_eff.astype(jnp.float32),
        window_strides=(1, 1),
        padding=[(eq_ph, eq_ph), (eq_pw, eq_pw)],
        rhs_dilation=(dilation, dilation),
        dimension_numbers=("NCHW", "OIHW", "NCHW"))
    scale = gamma / jnp.sqrt(running_var + eps)
    bias = beta - running_mean * scale
    y = y * scale[None, :, None, None] + bias[None, :, None, None]
    return jnp.maximum(y, 0.0).astype(x.dtype)


if __name__ == "__main__":
    # Module config: Deconv2dBlock(in_channels=4, out_channels=4,
    #                              kernel_size=3, stride=1, padding=1)
    N, Cin, Cout, H, W, k = 2, 4, 4, 16, 16, 3

    key = jax.random.PRNGKey(0)
    k1, k2, k3, k4, k5, k6 = jax.random.split(key, 6)
    x = jax.random.normal(k1, (N, Cin, H, W), dtype=jnp.float32)

    bound = 1.0 / math.sqrt(Cin * k * k)
    weight = jax.random.uniform(k2, (Cin, Cout, k, k), jnp.float32, -bound, bound)
    gamma = jax.random.uniform(k3, (Cout,), jnp.float32, 0.5, 1.5)
    beta = jax.random.normal(k4, (Cout,), dtype=jnp.float32) * 0.1
    running_mean = jax.random.normal(k5, (Cout,), dtype=jnp.float32) * 0.1
    running_var = jax.random.uniform(k6, (Cout,), jnp.float32, 0.5, 1.5)

    y = deconv2d_block(x, weight, gamma, beta, running_mean, running_var,
                       stride=1, padding=1, output_padding=0, dilation=1)
    y = jax.block_until_ready(y)

    y_ref = jax.block_until_ready(
        reference(x, weight, gamma, beta, running_mean, running_var,
                  padding=1, dilation=1))

    assert y.shape == (N, Cout, H, W)
    assert jnp.allclose(y, y_ref, atol=1e-4, rtol=1e-4), "mismatch vs reference"

    print("KERNEL_OK")
</pallas_src>

<mosaic_0001>
module attributes {stable_mosaic.version = 11 : i64} {
  func.func @kernel(%arg0: i32, %arg1: memref<1x16x16x4xf32, #tpu.memory_space<vmem>>, %arg2: memref<3x3x4x4xf32, #tpu.memory_space<vmem>>, %arg3: memref<1x4xf32, #tpu.memory_space<vmem>>, %arg4: memref<1x4xf32, #tpu.memory_space<vmem>>, %arg5: memref<1x16x16x4xf32, #tpu.memory_space<vmem>>, %arg6: memref<18x18x4xf32, #tpu.memory_space<vmem>>) attributes {dimension_semantics = [#tpu.dimension_semantics<parallel>], iteration_bounds = array<i64: 2>, scalar_prefetch = 0 : i64, scratch_operands = 1 : i64, tpu.core_type = #tpu.core_type<tc>, window_params = [{transform_indices = @transform_0, window_bounds = array<i64: 1, 16, 16, 4>}, {pipeline_mode = #tpu.pipeline_mode<synchronous>, transform_indices = @transform_1, window_bounds = array<i64: 3, 3, 4, 4>}, {pipeline_mode = #tpu.pipeline_mode<synchronous>, transform_indices = @transform_2, window_bounds = array<i64: 1, 4>}, {pipeline_mode = #tpu.pipeline_mode<synchronous>, transform_indices = @transform_3, window_bounds = array<i64: 1, 4>}, {transform_indices = @transform_4, window_bounds = array<i64: 1, 16, 16, 4>}]} {
    %cst = arith.constant 0.000000e+00 : f32
    %0 = vector.broadcast %cst : f32 to vector<18x18x4xf32>
    %c0 = arith.constant 0 : index
    %c0_0 = arith.constant 0 : index
    %c0_1 = arith.constant 0 : index
    %1 = vector.load %arg6[%c0, %c0_0, %c0_1] : memref<18x18x4xf32, #tpu.memory_space<vmem>>, vector<18x18x4xf32>
    tpu.vector_store %arg6[%c0, %c0_0, %c0_1], %0 {strides = array<i32>} : memref<18x18x4xf32, #tpu.memory_space<vmem>>, vector<18x18x4xf32>,
    %c0_2 = arith.constant 0 : index
    %c0_3 = arith.constant 0 : index
    %c0_4 = arith.constant 0 : index
    %c0_5 = arith.constant 0 : index
    %2 = vector.load %arg1[%c0_2, %c0_3, %c0_4, %c0_5] : memref<1x16x16x4xf32, #tpu.memory_space<vmem>>, vector<1x16x16x4xf32>
    %3 = vector.shape_cast %2 : vector<1x16x16x4xf32> to vector<16x16x4xf32>
    %c1 = arith.constant 1 : index
    %c1_6 = arith.constant 1 : index
    %c0_7 = arith.constant 0 : index
    %4 = vector.load %arg6[%c1, %c1_6, %c0_7] : memref<18x18x4xf32, #tpu.memory_space<vmem>>, vector<16x16x4xf32>
    tpu.vector_store %arg6[%c1, %c1_6, %c0_7], %3 {strides = array<i32>} : memref<18x18x4xf32, #tpu.memory_space<vmem>>, vector<16x16x4xf32>,
    %cst_8 = arith.constant 0.000000e+00 : f32
    %5 = vector.broadcast %cst_8 : f32 to vector<256x4xf32>
    %c0_9 = arith.constant 0 : index
    %c0_10 = arith.constant 0 : index
    %c0_11 = arith.constant 0 : index
    %6 = vector.load %arg6[%c0_9, %c0_10, %c0_11] : memref<18x18x4xf32, #tpu.memory_space<vmem>>, vector<16x16x4xf32>
    %7 = vector.shape_cast %6 : vector<16x16x4xf32> to vector<256x4xf32>
    %c0_12 = arith.constant 0 : index
    %c0_13 = arith.constant 0 : index
    %c0_14 = arith.constant 0 : index
    %c0_15 = arith.constant 0 : index
    %8 = vector.load %arg2[%c0_12, %c0_13, %c0_14, %c0_15] : memref<3x3x4x4xf32, #tpu.memory_space<vmem>>, vector<1x1x4x4xf32>
    %9 = vector.shape_cast %8 : vector<1x1x4x4xf32> to vector<4x4xf32>
    %cst_16 = arith.constant dense<0.000000e+00> : vector<256x4xf32>
    %10 = tpu.matmul %7, %9, %cst_16 {dimension_numbers = #tpu.dot_dimension_numbers<[1], [0], [0], [1], [0, 0, 1, 1], [], []>} : vector<256x4xf32>, vector<4x4xf32>, vector<256x4xf32> -> vector<256x4xf32>
    %11 = arith.addf %5, %10 : vector<256x4xf32>
    %c0_17 = arith.constant 0 : index
    %c1_18 = arith.constant 1 : index
    %c0_19 = arith.constant 0 : index
    %12 = vector.load %arg6[%c0_17, %c1_18, %c0_19] : memref<18x18x4xf32, #tpu.memory_space<vmem>>, vector<16x16x4xf32>
    %13 = vector.shape_cast %12 : vector<16x16x4xf32> to vector<256x4xf32>
    %c0_20 = arith.constant 0 : index
    %c1_21 = arith.constant 1 : index
    %c0_22 = arith.constant 0 : index
    %c0_23 = arith.constant 0 : index
    %14 = vector.load %arg2[%c0_20, %c1_21, %c0_22, %c0_23] : memref<3x3x4x4xf32, #tpu.memory_space<vmem>>, vector<1x1x4x4xf32>
    %15 = vector.shape_cast %14 : vector<1x1x4x4xf32> to vector<4x4xf32>
    %cst_24 = arith.constant dense<0.000000e+00> : vector<256x4xf32>
    %16 = tpu.matmul %13, %15, %cst_24 {dimension_numbers = #tpu.dot_dimension_numbers<[1], [0], [0], [1], [0, 0, 1, 1], [], []>} : vector<256x4xf32>, vector<4x4xf32>, vector<256x4xf32> -> vector<256x4xf32>
    %17 = arith.addf %11, %16 : vector<256x4xf32>
    %c0_25 = arith.constant 0 : index
    %c2 = arith.constant 2 : index
    %c0_26 = arith.constant 0 : index
    %18 = vector.load %arg6[%c0_25, %c2, %c0_26] : memref<18x18x4xf32, #tpu.memory_space<vmem>>, vector<16x16x4xf32>
    %19 = vector.shape_cast %18 : vector<16x16x4xf32> to vector<256x4xf32>
    %c0_27 = arith.constant 0 : index
    %c2_28 = arith.constant 2 : index
    %c0_29 = arith.constant 0 : index
    %c0_30 = arith.constant 0 : index
    %20 = vector.load %arg2[%c0_27, %c2_28, %c0_29, %c0_30] : memref<3x3x4x4xf32, #tpu.memory_space<vmem>>, vector<1x1x4x4xf32>
    %21 = vector.shape_cast %20 : vector<1x1x4x4xf32> to vector<4x4xf32>
    %cst_31 = arith.constant dense<0.000000e+00> : vector<256x4xf32>
    %22 = tpu.matmul %19, %21, %cst_31 {dimension_numbers = #tpu.dot_dimension_numbers<[1], [0], [0], [1], [0, 0, 1, 1], [], []>} : vector<256x4xf32>, vector<4x4xf32>, vector<256x4xf32> -> vector<256x4xf32>
    %23 = arith.addf %17, %22 : vector<256x4xf32>
    %c1_32 = arith.constant 1 : index
    %c0_33 = arith.constant 0 : index
    %c0_34 = arith.constant 0 : index
    %24 = vector.load %arg6[%c1_32, %c0_33, %c0_34] : memref<18x18x4xf32, #tpu.memory_space<vmem>>, vector<16x16x4xf32>
    %25 = vector.shape_cast %24 : vector<16x16x4xf32> to vector<256x4xf32>
    %c1_35 = arith.constant 1 : index
    %c0_36 = arith.constant 0 : index
    %c0_37 = arith.constant 0 : index
    %c0_38 = arith.constant 0 : index
    %26 = vector.load %arg2[%c1_35, %c0_36, %c0_37, %c0_38] : memref<3x3x4x4xf32, #tpu.memory_space<vmem>>, vector<1x1x4x4xf32>
    %27 = vector.shape_cast %26 : vector<1x1x4x4xf32> to vector<4x4xf32>
    %cst_39 = arith.constant dense<0.000000e+00> : vector<256x4xf32>
    %28 = tpu.matmul %25, %27, %cst_39 {dimension_numbers = #tpu.dot_dimension_numbers<[1], [0], [0], [1], [0, 0, 1, 1], [], []>} : vector<256x4xf32>, vector<4x4xf32>, vector<256x4xf32> -> vector<256x4xf32>
    %29 = arith.addf %23, %28 : vector<256x4xf32>
    %c1_40 = arith.constant 1 : index
    %c1_41 = arith.constant 1 : index
    %c0_42 = arith.constant 0 : index
    %30 = vector.load %arg6[%c1_40, %c1_41, %c0_42] : memref<18x18x4xf32, #tpu.memory_space<vmem>>, vector<16x16x4xf32>
    %31 = vector.shape_cast %30 : vector<16x16x4xf32> to vector<256x4xf32>
    %c1_43 = arith.constant 1 : index
    %c1_44 = arith.constant 1 : index
    %c0_45 = arith.constant 0 : index
    %c0_46 = arith.constant 0 : index
    %32 = vector.load %arg2[%c1_43, %c1_44, %c0_45, %c0_46] : memref<3x3x4x4xf32, #tpu.memory_space<vmem>>, vector<1x1x4x4xf32>
    %33 = vector.shape_cast %32 : vector<1x1x4x4xf32> to vector<4x4xf32>
    %cst_47 = arith.constant dense<0.000000e+00> : vector<256x4xf32>
    %34 = tpu.matmul %31, %33, %cst_47 {dimension_numbers = #tpu.dot_dimension_numbers<[1], [0], [0], [1], [0, 0, 1, 1], [], []>} : vector<256x4xf32>, vector<4x4xf32>, vector<256x4xf32> -> vector<256x4xf32>
    %35 = arith.addf %29, %34 : vector<256x4xf32>
    %c1_48 = arith.constant 1 : index
    %c2_49 = arith.constant 2 : index
    %c0_50 = arith.constant 0 : index
    %36 = vector.load %arg6[%c1_48, %c2_49, %c0_50] : memref<18x18x4xf32, #tpu.memory_space<vmem>>, vector<16x16x4xf32>
    %37 = vector.shape_cast %36 : vector<16x16x4xf32> to vector<256x4xf32>
    %c1_51 = arith.constant 1 : index
    %c2_52 = arith.constant 2 : index
    %c0_53 = arith.constant 0 : index
    %c0_54 = arith.constant 0 : index
    %38 = vector.load %arg2[%c1_51, %c2_52, %c0_53, %c0_54] : memref<3x3x4x4xf32, #tpu.memory_space<vmem>>, vector<1x1x4x4xf32>
    %39 = vector.shape_cast %38 : vector<1x1x4x4xf32> to vector<4x4xf32>
    %cst_55 = arith.constant dense<0.000000e+00> : vector<256x4xf32>
    %40 = tpu.matmul %37, %39, %cst_55 {dimension_numbers = #tpu.dot_dimension_numbers<[1], [0], [0], [1], [0, 0, 1, 1], [], []>} : vector<256x4xf32>, vector<4x4xf32>, vector<256x4xf32> -> vector<256x4xf32>
    %41 = arith.addf %35, %40 : vector<256x4xf32>
    %c2_56 = arith.constant 2 : index
    %c0_57 = arith.constant 0 : index
    %c0_58 = arith.constant 0 : index
    %42 = vector.load %arg6[%c2_56, %c0_57, %c0_58] : memref<18x18x4xf32, #tpu.memory_space<vmem>>, vector<16x16x4xf32>
    %43 = vector.shape_cast %42 : vector<16x16x4xf32> to vector<256x4xf32>
    %c2_59 = arith.constant 2 : index
    %c0_60 = arith.constant 0 : index
    %c0_61 = arith.constant 0 : index
    %c0_62 = arith.constant 0 : index
    %44 = vector.load %arg2[%c2_59, %c0_60, %c0_61, %c0_62] : memref<3x3x4x4xf32, #tpu.memory_space<vmem>>, vector<1x1x4x4xf32>
    %45 = vector.shape_cast %44 : vector<1x1x4x4xf32> to vector<4x4xf32>
    %cst_63 = arith.constant dense<0.000000e+00> : vector<256x4xf32>
    %46 = tpu.matmul %43, %45, %cst_63 {dimension_numbers = #tpu.dot_dimension_numbers<[1], [0], [0], [1], [0, 0, 1, 1], [], []>} : vector<256x4xf32>, vector<4x4xf32>, vector<256x4xf32> -> vector<256x4xf32>
    %47 = arith.addf %41, %46 : vector<256x4xf32>
    %c2_64 = arith.constant 2 : index
    %c1_65 = arith.constant 1 : index
    %c0_66 = arith.constant 0 : index
    %48 = vector.load %arg6[%c2_64, %c1_65, %c0_66] : memref<18x18x4xf32, #tpu.memory_space<vmem>>, vector<16x16x4xf32>
    %49 = vector.shape_cast %48 : vector<16x16x4xf32> to vector<256x4xf32>
    %c2_67 = arith.constant 2 : index
    %c1_68 = arith.constant 1 : index
    %c0_69 = arith.constant 0 : index
    %c0_70 = arith.constant 0 : index
    %50 = vector.load %arg2[%c2_67, %c1_68, %c0_69, %c0_70] : memref<3x3x4x4xf32, #tpu.memory_space<vmem>>, vector<1x1x4x4xf32>
    %51 = vector.shape_cast %50 : vector<1x1x4x4xf32> to vector<4x4xf32>
    %cst_71 = arith.constant dense<0.000000e+00> : vector<256x4xf32>
    %52 = tpu.matmul %49, %51, %cst_71 {dimension_numbers = #tpu.dot_dimension_numbers<[1], [0], [0], [1], [0, 0, 1, 1], [], []>} : vector<256x4xf32>, vector<4x4xf32>, vector<256x4xf32> -> vector<256x4xf32>
    %53 = arith.addf %47, %52 : vector<256x4xf32>
    %c2_72 = arith.constant 2 : index
    %c2_73 = arith.constant 2 : index
    %c0_74 = arith.constant 0 : index
    %54 = vector.load %arg6[%c2_72, %c2_73, %c0_74] : memref<18x18x4xf32, #tpu.memory_space<vmem>>, vector<16x16x4xf32>
    %55 = vector.shape_cast %54 : vector<16x16x4xf32> to vector<256x4xf32>
    %c2_75 = arith.constant 2 : index
    %c2_76 = arith.constant 2 : index
    %c0_77 = arith.constant 0 : index
    %c0_78 = arith.constant 0 : index
    %56 = vector.load %arg2[%c2_75, %c2_76, %c0_77, %c0_78] : memref<3x3x4x4xf32, #tpu.memory_space<vmem>>, vector<1x1x4x4xf32>
    %57 = vector.shape_cast %56 : vector<1x1x4x4xf32> to vector<4x4xf32>
    %cst_79 = arith.constant dense<0.000000e+00> : vector<256x4xf32>
    %58 = tpu.matmul %55, %57, %cst_79 {dimension_numbers = #tpu.dot_dimension_numbers<[1], [0], [0], [1], [0, 0, 1, 1], [], []>} : vector<256x4xf32>, vector<4x4xf32>, vector<256x4xf32> -> vector<256x4xf32>
    %59 = arith.addf %53, %58 : vector<256x4xf32>
    %c0_80 = arith.constant 0 : index
    %c0_81 = arith.constant 0 : index
    %60 = vector.load %arg3[%c0_80, %c0_81] : memref<1x4xf32, #tpu.memory_space<vmem>>, vector<1x4xf32>
    %61 = vector.broadcast %60 : vector<1x4xf32> to vector<256x4xf32>
    %62 = arith.mulf %59, %61 : vector<256x4xf32>
    %c0_82 = arith.constant 0 : index
    %c0_83 = arith.constant 0 : index
    %63 = vector.load %arg4[%c0_82, %c0_83] : memref<1x4xf32, #tpu.memory_space<vmem>>, vector<1x4xf32>
    %64 = vector.broadcast %63 : vector<1x4xf32> to vector<256x4xf32>
    %65 = arith.addf %62, %64 : vector<256x4xf32>
    %cst_84 = arith.constant 0.000000e+00 : f32
    %66 = vector.broadcast %cst_84 : f32 to vector<256x4xf32>
    %67 = arith.maximumf %65, %66 : vector<256x4xf32>
    %68 = vector.shape_cast %67 : vector<256x4xf32> to vector<16x16x4xf32>
    %c0_85 = arith.constant 0 : index
    %c0_86 = arith.constant 0 : index
    %c0_87 = arith.constant 0 : index
    %c0_88 = arith.constant 0 : index
    %69 = vector.load %arg5[%c0_85, %c0_86, %c0_87, %c0_88] : memref<1x16x16x4xf32, #tpu.memory_space<vmem>>, vector<1x16x16x4xf32>
    %70 = vector.shape_cast %69 : vector<1x16x16x4xf32> to vector<16x16x4xf32>
    %71 = vector.shape_cast %68 : vector<16x16x4xf32> to vector<1x16x16x4xf32>
    tpu.vector_store %arg5[%c0_85, %c0_86, %c0_87, %c0_88], %71 {strides = array<i32>} : memref<1x16x16x4xf32, #tpu.memory_space<vmem>>, vector<1x16x16x4xf32>,
    return
  }
  func.func @transform_0(%arg0: i32) -> (i32, i32, i32, i32) {
    %c0_i32 = arith.constant 0 : i32
    %c0_i32_0 = arith.constant 0 : i32
    %c0_i32_1 = arith.constant 0 : i32
    %c0_i32_2 = arith.constant 0 : i32
    return %arg0, %c0_i32, %c0_i32_0, %c0_i32_1 : i32, i32, i32, i32
  }
  func.func @transform_1(%arg0: i32) -> (i32, i32, i32, i32) {
    %c0_i32 = arith.constant 0 : i32
    %c0_i32_0 = arith.constant 0 : i32
    %c0_i32_1 = arith.constant 0 : i32
    %c0_i32_2 = arith.constant 0 : i32
    %c0_i32_3 = arith.constant 0 : i32
    return %c0_i32, %c0_i32_0, %c0_i32_1, %c0_i32_2 : i32, i32, i32, i32
  }
  func.func @transform_2(%arg0: i32) -> (i32, i32) {
    %c0_i32 = arith.constant 0 : i32
    %c0_i32_0 = arith.constant 0 : i32
    %c0_i32_1 = arith.constant 0 : i32
    return %c0_i32, %c0_i32_0 : i32, i32
  }
  func.func @transform_3(%arg0: i32) -> (i32, i32) {
    %c0_i32 = arith.constant 0 : i32
    %c0_i32_0 = arith.constant 0 : i32
    %c0_i32_1 = arith.constant 0 : i32
    return %c0_i32, %c0_i32_0 : i32, i32
  }
  func.func @transform_4(%arg0: i32) -> (i32, i32, i32, i32) {
    %c0_i32 = arith.constant 0 : i32
    %c0_i32_0 = arith.constant 0 : i32
    %c0_i32_1 = arith.constant 0 : i32
    %c0_i32_2 = arith.constant 0 : i32
    return %arg0, %c0_i32, %c0_i32_0, %c0_i32_1 : i32, i32, i32, i32
  }
}

</mosaic_0001>

<bundles_post_ra>
// kernel: tpu_custom_call.1
= control target key start
LH: loop header
LB: loop body
LE: loop exit
PB: predicated region body
PF: predicated region fallthrough
CT: control target
= control target key end

     0   :  { %s5331_s15 = smov 0   ;;  %s6466_s0 = inlined_call_operand.vmem [shape: f32[2,16,16,4], index: 0, kind: input, shape index: {}]   ;;  %s6467_s1 = inlined_call_operand.vmem [shape: f32[3,3,4,4], index: 1, kind: input, shape index: {}]   ;;  %s6468_s2 = inlined_call_operand.vmem [shape: f32[1,4], index: 2, kind: input, shape index: {}]   ;;  %s6469_s3 = inlined_call_operand.vmem [shape: f32[1,4], index: 3, kind: input, shape index: {}]   ;;  %s6470_s4 = inlined_call_operand.vmem [shape: f32[2,16,16,4], index: 4, kind: output, shape index: {}]  }
   0x1 LB: > { %s3963_s16 = sadd.s32 4294967295, %s5303_s15   ;;  %p3967_p0 = scmp.ge.s32.totalorder %s5303_s15, 1  ;;  %s5303_s15 = sphi %s5331_s15, %s14_s15  }
   0x2   : > { %p162_p1 = scmp.lt.s32.totalorder %s5303_s15, 3 }
   0x4   : > { %p163_p2 = pnand %p3967_p0, %p162_p1 }
   0x6   : > { %166 = sbr.rel (%p163_p2) target bundleno = 556 (0x22c), region = 36 }
   0xd   : > { %v5342_v0 = vld [vmem:[%s6467_s1 + $0x4] sm:$0xf]  ;;  %vm482_vm0 = vcmask 1043456   ;;  %vm198_vm1 = vcmask 31744   ;;  %vm201_vm2 = vcmask 25600   ;;  %v5305_v1 = vmov 0.0  }
   0xe   : > { %4580 = vmatprep.subr.msk.mxu1 %vm482_vm0, %v5342_v0  ;;  %199 = vst.msk [vmem:[#allocation2] sm:$0xff] %vm198_vm1, %v5305_v1  ;;  %200 = vst.msk [vmem:[#allocation2 + $0x8] sm:$0xff] %vm198_vm1, %v5305_v1  ;;  %v5403_v2 = vld [vmem:[%s6467_s1 + $0x10] sm:$0xf]  ;;  %p188_p3 = scmp.lt.s32.totalorder %s3963_s16, 1 }
   0xf   : > { %203 = vst.msk [vmem:[#allocation2 + $0x18] sm:$0xff] %vm198_vm1, %v5305_v1  ;;  %204 = vst.msk [vmem:[#allocation2 + $0x20] sm:$0xff] %vm198_vm1, %v5305_v1  ;;  %v351_v3 = vld [vmem:[%s6467_s1] sm:$0xf]  ;;  %4581 = vmatpush3.msk.msra.mxu1 %vm482_vm0, %v5342_v0  ;;  %4780 = vmatprep.subr.msk.mxu0 %vm482_vm0, %v5403_v2  ;;  %v5417_v4 = vld [vmem:[%s6467_s1 + $0x14] sm:$0xf] }
  0x10   : > { %206 = vst.msk [vmem:[#allocation2 + $0x30] sm:$0xff] %vm198_vm1, %v5305_v1  ;;  %207 = vst.msk [vmem:[#allocation2 + $0x38] sm:$0xff] %vm198_vm1, %v5305_v1  ;;  %4781 = vmatpush3.msk.msra.mxu0 %vm482_vm0, %v5403_v2  ;;  %s6580_s16 = smov (!%p188_p3, %s3963_s16), 1  ;;  %4630 = vmatprep.subr.msk.mxu1 %vm482_vm0, %v351_v3  ;;  %v5442_v8 = vld [vmem:[%s6467_s1 + $0x8] sm:$0xf] }
  0x11   : > { %209 = vst.msk [vmem:[#allocation2 + $0x48] sm:$0xff] %vm198_vm1, %v5305_v1  ;;  %210 = vst.msk [vmem:[#allocation2 + $0x50] sm:$0xff] %vm198_vm1, %v5305_v1  ;;  %4830 = vmatprep.subr.msk.mxu0 %vm482_vm0, %v5417_v4  ;;  %s4281_s25 = sshll.u32 %s6580_s16, 8  ;;  %v5497_v33 = vld [vmem:[%s6467_s1 + $0x18] sm:$0xf] }
  0x12   : > { %212 = vst.msk [vmem:[#allocation2 + $0x60] sm:$0xff] %vm198_vm1, %v5305_v1  ;;  %213 = vst.msk [vmem:[#allocation2 + $0x68] sm:$0xff] %vm198_vm1, %v5305_v1  ;;  %s5434_s28 = scalar_lea.vmem %s6466_s0, %s4281_s25  ;;  %v5626_v63 = vld [vmem:[%s6467_s1 + $0x1c] sm:$0xf]  ;;  %s6330_s21 = scalar_lea.vmem %s6470_s4, %s4281_s25 }
  0x13   : > { %215 = vst.msk [vmem:[#allocation2 + $0x78] sm:$0xff] %vm198_vm1, %v5305_v1  ;;  %216 = vst.msk [vmem:[#allocation2 + $0x80] sm:$0xff] %vm198_vm1, %v5305_v1  ;;  %v254_v5 = vld [vmem:[%s5434_s28] sm:$0xff]  ;;  %v255_v6 = vld [vmem:[%s5434_s28 + $0x8] sm:$0xff] }
  0x14   : > { %218 = vst.msk [vmem:[#allocation2 + $0x90] sm:$0xff] %vm198_vm1, %v5305_v1  ;;  %219 = vst.msk [vmem:[#allocation2 + $0x98] sm:$0xff] %vm198_vm1, %v5305_v1  ;;  %v256_v7 = vld [vmem:[%s5434_s28 + $0x10] sm:$0xff]  ;;  %v257_v11 = vld [vmem:[%s5434_s28 + $0x18] sm:$0xff] }
  0x15   : > { %221 = vst.msk [vmem:[#allocation2 + $0xa8] sm:$0xff] %vm198_vm1, %v5305_v1  ;;  %222 = vst.msk [vmem:[#allocation2 + $0xb0] sm:$0xff] %vm198_vm1, %v5305_v1  ;;  %v352_v9 = vld [vmem:[#allocation2 + $0x1] sm:$0xff]  ;;  %v260_v14 = vld [vmem:[%s5434_s28 + $0x30] sm:$0xff] }
  0x16   : > { %224 = vst.msk [vmem:[#allocation2 + $0xc0] sm:$0xff] %vm198_vm1, %v5305_v1  ;;  %225 = vst.msk [vmem:[#allocation2 + $0xc8] sm:$0xff] %vm198_vm1, %v5305_v1  ;;  %4582 = vmatprep.mubr.msk.f32.mxu1 %vm198_vm1, %v352_v9  ;;  %v258_v12 = vld [vmem:[%s5434_s28 + $0x20] sm:$0xff]  ;;  %v259_v13 = vld [vmem:[%s5434_s28 + $0x28] sm:$0xff] }
  0x17   : > { %227 = vst.msk [vmem:[#allocation2 + $0xd8] sm:$0xff] %vm198_vm1, %v5305_v1  ;;  %228 = vst.msk [vmem:[#allocation2 + $0xe0] sm:$0xff] %vm198_vm1, %v5305_v1  ;;  %v261_v15 = vld [vmem:[%s5434_s28 + $0x38] sm:$0xff]  ;;  %v262_v16 = vld [vmem:[%s5434_s28 + $0x40] sm:$0xff] }
  0x18   : > { %230 = vst.msk [vmem:[#allocation2 + $0xf0] sm:$0xff] %vm198_vm1, %v5305_v1  ;;  %231 = vst.msk [vmem:[#allocation2 + $0xf8] sm:$0xff] %vm198_vm1, %v5305_v1  ;;  %v263_v17 = vld [vmem:[%s5434_s28 + $0x48] sm:$0xff]  ;;  %v264_v18 = vld [vmem:[%s5434_s28 + $0x50] sm:$0xff] }
  0x19   : > { %233 = vst.msk [vmem:[#allocation2 + $0x108] sm:$0xff] %vm198_vm1, %v5305_v1  ;;  %234 = vst.msk [vmem:[#allocation2 + $0x110] sm:$0xff] %vm198_vm1, %v5305_v1  ;;  %v265_v19 = vld [vmem:[%s5434_s28 + $0x58] sm:$0xff]  ;;  %v266_v20 = vld [vmem:[%s5434_s28 + $0x60] sm:$0xff] }
  0x1a   : > { %236 = vst.msk [vmem:[#allocation2 + $0x120] sm:$0xff] %vm198_vm1, %v5305_v1  ;;  %237 = vst.msk [vmem:[#allocation2 + $0x128] sm:$0xff] %vm198_vm1, %v5305_v1  ;;  %v267_v21 = vld [vmem:[%s5434_s28 + $0x68] sm:$0xff]  ;;  %v268_v22 = vld [vmem:[%s5434_s28 + $0x70] sm:$0xff] }
  0x1b   : > { %239 = vst.msk [vmem:[#allocation2 + $0x138] sm:$0xff] %vm198_vm1, %v5305_v1  ;;  %240 = vst.msk [vmem:[#allocation2 + $0x140] sm:$0xff] %vm198_vm1, %v5305_v1  ;;  %v269_v23 = vld [vmem:[%s5434_s28 + $0x78] sm:$0xff]  ;;  %v270_v24 = vld [vmem:[%s5434_s28 + $0x80] sm:$0xff] }
  0x1c   : > { %242 = vst.msk [vmem:[#allocation2 + $0x150] sm:$0xff] %vm198_vm1, %v5305_v1  ;;  %243 = vst.msk [vmem:[#allocation2 + $0x158] sm:$0xff] %vm198_vm1, %v5305_v1  ;;  %v271_v25 = vld [vmem:[%s5434_s28 + $0x88] sm:$0xff]  ;;  %v272_v26 = vld [vmem:[%s5434_s28 + $0x90] sm:$0xff] }
  0x1d   : > { %245 = vst.msk [vmem:[#allocation2 + $0x168] sm:$0xff] %vm198_vm1, %v5305_v1  ;;  %246 = vst.msk [vmem:[#allocation2 + $0x170] sm:$0xff] %vm198_vm1, %v5305_v1  ;;  %v273_v27 = vld [vmem:[%s5434_s28 + $0x98] sm:$0xff]  ;;  %v274_v28 = vld [vmem:[%s5434_s28 + $0xa0] sm:$0xff] }
  0x1e   : > { %248 = vst.msk [vmem:[#allocation2 + $0x180] sm:$0xff] %vm198_vm1, %v5305_v1  ;;  %249 = vst.msk [vmem:[#allocation2 + $0x188] sm:$0xff] %vm198_vm1, %v5305_v1  ;;  %v275_v29 = vld [vmem:[%s5434_s28 + $0xa8] sm:$0xff]  ;;  %v276_v38 = vld [vmem:[%s5434_s28 + $0xb0] sm:$0xff] }
  0x1f   : > { %251 = vst.msk [vmem:[#allocation2 + $0x198] sm:$0xff] %vm198_vm1, %v5305_v1  ;;  %252 = vst.msk [vmem:[#allocation2 + $0x1a0] sm:$0xff] %vm198_vm1, %v5305_v1  ;;  %v277_v39 = vld [vmem:[%s5434_s28 + $0xb8] sm:$0xff]  ;;  %v278_v40 = vld [vmem:[%s5434_s28 + $0xc0] sm:$0xff] }
  0x20   : > { %202 = vst.msk [vmem:[#allocation2 + $0x10] sm:$0x3] %vm201_vm2, %v5305_v1  ;;  %205 = vst.msk [vmem:[#allocation2 + $0x28] sm:$0x3] %vm201_vm2, %v5305_v1  ;;  %v279_v42 = vld [vmem:[%s5434_s28 + $0xc8] sm:$0xff]  ;;  %v280_v44 = vld [vmem:[%s5434_s28 + $0xd0] sm:$0xff] }
  0x21   : > { %208 = vst.msk [vmem:[#allocation2 + $0x40] sm:$0x3] %vm201_vm2, %v5305_v1  ;;  %211 = vst.msk [vmem:[#allocation2 + $0x58] sm:$0x3] %vm201_vm2, %v5305_v1  ;;  %v281_v45 = vld [vmem:[%s5434_s28 + $0xd8] sm:$0xff]  ;;  %v282_v46 = vld [vmem:[%s5434_s28 + $0xe0] sm:$0xff] }
  0x22   : > { %214 = vst.msk [vmem:[#allocation2 + $0x70] sm:$0x3] %vm201_vm2, %v5305_v1  ;;  %217 = vst.msk [vmem:[#allocation2 + $0x88] sm:$0x3] %vm201_vm2, %v5305_v1  ;;  %v283_v47 = vld [vmem:[%s5434_s28 + $0xe8] sm:$0xff]  ;;  %v284_v57 = vld [vmem:[%s5434_s28 + $0xf0] sm:$0xff] }
  0x23   : > { %220 = vst.msk [vmem:[#allocation2 + $0xa0] sm:$0x3] %vm201_vm2, %v5305_v1  ;;  %223 = vst.msk [vmem:[#allocation2 + $0xb8] sm:$0x3] %vm201_vm2, %v5305_v1  ;;  %v285_v58 = vld [vmem:[%s5434_s28 + $0xf8] sm:$0xff] }
  0x24   : > { %226 = vst.msk [vmem:[#allocation2 + $0xd0] sm:$0x3] %vm201_vm2, %v5305_v1  ;;  %229 = vst.msk [vmem:[#allocation2 + $0xe8] sm:$0x3] %vm201_vm2, %v5305_v1 }
  0x25   : > { %232 = vst.msk [vmem:[#allocation2 + $0x100] sm:$0x3] %vm201_vm2, %v5305_v1  ;;  %235 = vst.msk [vmem:[#allocation2 + $0x118] sm:$0x3] %vm201_vm2, %v5305_v1 }
  0x26   : > { %238 = vst.msk [vmem:[#allocation2 + $0x130] sm:$0x3] %vm201_vm2, %v5305_v1  ;;  %241 = vst.msk [vmem:[#allocation2 + $0x148] sm:$0x3] %vm201_vm2, %v5305_v1 }
  0x27   : > { %244 = vst.msk [vmem:[#allocation2 + $0x160] sm:$0x3] %vm201_vm2, %v5305_v1  ;;  %247 = vst.msk [vmem:[#allocation2 + $0x178] sm:$0x3] %vm201_vm2, %v5305_v1  ;;  %v353_v10 = vld [vmem:[#allocation2 + $0x9] sm:$0xff] }
  0x28   : > { %250 = vst.msk [vmem:[#allocation2 + $0x190] sm:$0x3] %vm201_vm2, %v5305_v1  ;;  %253 = vst.msk [vmem:[#allocation2 + $0x1a8] sm:$0x3] %vm201_vm2, %v5305_v1  ;;  %4583 = vmatmul.mubr.msk.f32.vlgmr.msra.gmra.mrb[0].mxu1 %vm198_vm1, %v353_v10 }
  0x29   : > { %287 = vst.msk [vmem:[#allocation2 + $0x19] sm:$0xff] %vm198_vm1, %v254_v5  ;;  %288 = vst.msk [vmem:[#allocation2 + $0x21] sm:$0xff] %vm198_vm1, %v255_v6  ;;  %4631 = vmatpush3.msk.msra.mxu1 %vm482_vm0, %v351_v3 }
  0x2a   : > { %289 = vst.msk [vmem:[#allocation2 + $0x31] sm:$0xff] %vm198_vm1, %v256_v7  ;;  %290 = vst.msk [vmem:[#allocation2 + $0x39] sm:$0xff] %vm198_vm1, %v257_v11  ;;  %4680 = vmatprep.subr.msk.mxu1 %vm482_vm0, %v5442_v8 }
  0x2b   : > { %291 = vst.msk [vmem:[#allocation2 + $0x49] sm:$0xff] %vm198_vm1, %v258_v12  ;;  %292 = vst.msk [vmem:[#allocation2 + $0x51] sm:$0xff] %vm198_vm1, %v259_v13 }
  0x2c   : > { %293 = vst.msk [vmem:[#allocation2 + $0x61] sm:$0xff] %vm198_vm1, %v260_v14  ;;  %294 = vst.msk [vmem:[#allocation2 + $0x69] sm:$0xff] %vm198_vm1, %v261_v15 }
  0x2d   : > { %295 = vst.msk [vmem:[#allocation2 + $0x79] sm:$0xff] %vm198_vm1, %v262_v16  ;;  %296 = vst.msk [vmem:[#allocation2 + $0x81] sm:$0xff] %vm198_vm1, %v263_v17 }
  0x2e   : > { %297 = vst.msk [vmem:[#allocation2 + $0x91] sm:$0xff] %vm198_vm1, %v264_v18  ;;  %298 = vst.msk [vmem:[#allocation2 + $0x99] sm:$0xff] %vm198_vm1, %v265_v19 }
  0x2f   : > { %299 = vst.msk [vmem:[#allocation2 + $0xa9] sm:$0xff] %vm198_vm1, %v266_v20  ;;  %300 = vst.msk [vmem:[#allocation2 + $0xb1] sm:$0xff] %vm198_vm1, %v267_v21 }
  0x30   : > { %301 = vst.msk [vmem:[#allocation2 + $0xc1] sm:$0xff] %vm198_vm1, %v268_v22  ;;  %302 = vst.msk [vmem:[#allocation2 + $0xc9] sm:$0xff] %vm198_vm1, %v269_v23  ;;  %v354_v30 = vld [vmem:[#allocation2 + $0x19] sm:$0xff]  ;;  %v355_v31 = vld [vmem:[#allocation2 + $0x21] sm:$0xff] }
  0x31   : > { %303 = vst.msk [vmem:[#allocation2 + $0xd9] sm:$0xff] %vm198_vm1, %v270_v24  ;;  %304 = vst.msk [vmem:[#allocation2 + $0xe1] sm:$0xff] %vm198_vm1, %v271_v25  ;;  %v5487_v32 = vld [vmem:[#allocation2 + $0x31] sm:$0xff]  ;;  %4585 = vmatprep.mubr.msk.f32.mxu1 %vm198_vm1, %v354_v30  ;;  %4782 = vmatprep.mubr.msk.f32.mxu0 %vm198_vm1, %v354_v30  ;;  %v5505_v34 = vld [vmem:[#allocation2 + $0x39] sm:$0xff] }
  0x32   : > { %305 = vst.msk [vmem:[#allocation2 + $0xf1] sm:$0xff] %vm198_vm1, %v272_v26  ;;  %306 = vst.msk [vmem:[#allocation2 + $0xf9] sm:$0xff] %vm198_vm1, %v273_v27  ;;  %4586 = vmatmul.mubr.msk.f32.gmra.mrb[2].mxu1 %vm198_vm1, %v355_v31  ;;  %4783 = vmatmul.mubr.msk.f32.vlgmr.msra.gmra.mrb[0].mxu0 %vm198_vm1, %v355_v31  ;;  %v5509_v35 = vld [vmem:[#allocation2 + $0x49] sm:$0xff]  ;;  %v5521_v36 = vld [vmem:[#allocation2 + $0x51] sm:$0xff] }
  0x33   : > { %307 = vst.msk [vmem:[#allocation2 + $0x109] sm:$0xff] %vm198_vm1, %v274_v28  ;;  %308 = vst.msk [vmem:[#allocation2 + $0x111] sm:$0xff] %vm198_vm1, %v275_v29  ;;  %4831 = vmatpush3.msk.msra.mxu0 %vm482_vm0, %v5417_v4  ;;  %4588 = vmatprep.mubr.msk.f32.mxu1 %vm198_vm1, %v5487_v32  ;;  %v5523_v37 = vld [vmem:[#allocation2 + $0x61] sm:$0xff]  ;;  %v5537_v41 = vld [vmem:[#allocation2 + $0x69] sm:$0xff] }
  0x34   : > { %4785 = vmatprep.mubr.msk.f32.mxu0 %vm198_vm1, %v5487_v32  ;;  %4880 = vmatprep.subr.msk.mxu0 %vm482_vm0, %v5497_v33  ;;  %309 = vst.msk [vmem:[#allocation2 + $0x121] sm:$0xff] %vm198_vm1, %v276_v38  ;;  %310 = vst.msk [vmem:[#allocation2 + $0x129] sm:$0xff] %vm198_vm1, %v277_v39  ;;  %v5542_v43 = vld [vmem:[#allocation2 + $0x79] sm:$0xff]  ;;  %v5560_v48 = vld [vmem:[#allocation2 + $0x81] sm:$0xff] }
  0x35   : > { %311 = vst.msk [vmem:[#allocation2 + $0x139] sm:$0xff] %vm198_vm1, %v278_v40  ;;  %312 = vst.msk [vmem:[#allocation2 + $0x141] sm:$0xff] %vm198_vm1, %v279_v42  ;;  %v5563_v49 = vld [vmem:[#allocation2 + $0x91] sm:$0xff]  ;;  %v5573_v50 = vld [vmem:[#allocation2 + $0x99] sm:$0xff] }
  0x36   : > { %4589 = vmatmul.mubr.msk.f32.gmra.mrb[4].mxu1 %vm198_vm1, %v5505_v34  ;;  %4786 = vmatmul.mubr.msk.f32.gmra.mrb[2].mxu0 %vm198_vm1, %v5505_v34  ;;  %313 = vst.msk [vmem:[#allocation2 + $0x151] sm:$0xff] %vm198_vm1, %v280_v44  ;;  %314 = vst.msk [vmem:[#allocation2 + $0x159] sm:$0xff] %vm198_vm1, %v281_v45  ;;  %v5575_v51 = vld [vmem:[#allocation2 + $0xa9] sm:$0xff]  ;;  %v5585_v52 = vld [vmem:[#allocation2 + $0xb1] sm:$0xff] }
  0x37   : > { %4591 = vmatprep.mubr.msk.f32.mxu1 %vm198_vm1, %v5509_v35  ;;  %4788 = vmatprep.mubr.msk.f32.mxu0 %vm198_vm1, %v5509_v35  ;;  %315 = vst.msk [vmem:[#allocation2 + $0x169] sm:$0xff] %vm198_vm1, %v282_v46  ;;  %316 = vst.msk [vmem:[#allocation2 + $0x171] sm:$0xff] %vm198_vm1, %v283_v47  ;;  %v5587_v53 = vld [vmem:[#allocation2 + $0xc1] sm:$0xff]  ;;  %v5597_v54 = vld [vmem:[#allocation2 + $0xc9] sm:$0xff] }
  0x38   : > { %6517 = vst [vmem:[#allocation3_spill] sm:$0xff] %v5597_v54  ;;  %v5599_v55 = vld [vmem:[#allocation2 + $0x1a] sm:$0xff]  ;;  %317 = vst.msk [vmem:[#allocation2 + $0x181] sm:$0xff] %vm198_vm1, %v284_v57  ;;  %v5617_v60 = vld [vmem:[#allocation2 + $0x22] sm:$0xff] }
  0x39   : > { %v5601_v56 = vld [vmem:[#allocation2 + $0xd9] sm:$0xff]  ;;  %318 = vst.msk [vmem:[#allocation2 + $0x189] sm:$0xff] %vm198_vm1, %v285_v58  ;;  %v5615_v59 = vld [vmem:[#allocation2 + $0xe1] sm:$0xff]  ;;  %v5619_v61 = vld [vmem:[#allocation2 + $0xf1] sm:$0xff] }
  0x3a   : > { %4592 = vmatmul.mubr.msk.f32.gmra.mrb[6].mxu1 %vm198_vm1, %v5521_v36  ;;  %4789 = vmatmul.mubr.msk.f32.gmra.mrb[4].mxu0 %vm198_vm1, %v5521_v36  ;;  %6518 = vst [vmem:[#allocation4_spill] sm:$0xff] %v5601_v56  ;;  %6519 = vst [vmem:[#allocation5_spill] sm:$0xff] %v5615_v59  ;;  %v5621_v62 = vld [vmem:[#allocation2 + $0x32] sm:$0xff]  ;;  %v5638_v1 = vld [vmem:[#allocation2 + $0x3a] sm:$0xff] }
  0x3b   : > { %4594 = vmatprep.mubr.msk.f32.mxu1 %vm198_vm1, %v5523_v37  ;;  %4791 = vmatprep.mubr.msk.f32.mxu0 %vm198_vm1, %v5523_v37  ;;  %6520 = vst [vmem:[#allocation6_spill] sm:$0xff] %v5619_v61  ;;  %v5636_v0 = vld [vmem:[#allocation2 + $0xf9] sm:$0xff]  ;;  %v5642_v3 = vld [vmem:[#allocation2 + $0x109] sm:$0xff]  ;;  %v5656_v5 = vld [vmem:[#allocation2 + $0x111] sm:$0xff] }
  0x3c   : > { %6521 = vst [vmem:[#allocation7_spill] sm:$0xff] %v5636_v0  ;;  %6522 = vst [vmem:[#allocation8_spill] sm:$0xff] %v5642_v3  ;;  %v5644_v4 = vld [vmem:[#allocation2 + $0x4a] sm:$0xff]  ;;  %v5658_v6 = vld [vmem:[#allocation2 + $0x52] sm:$0xff] }
  0x3d   : > { %6523 = vst [vmem:[#allocation9_spill] sm:$0xff] %v5656_v5  ;;  %v5660_v7 = vld [vmem:[#allocation2 + $0x121] sm:$0xff]  ;;  %v5672_v10 = vld [vmem:[#allocation2 + $0x129] sm:$0xff]  ;;  %v5676_v12 = vld [vmem:[#allocation2 + $0x139] sm:$0xff] }
  0x3e   : > { %4595 = vmatmul.mubr.msk.f32.gmra.mrb[8].mxu1 %vm198_vm1, %v5537_v41  ;;  %4792 = vmatmul.mubr.msk.f32.gmra.mrb[6].mxu0 %vm198_vm1, %v5537_v41  ;;  %6524 = vst [vmem:[#allocation10_spill] sm:$0xff] %v5660_v7  ;;  %v5662_v9 = vld [vmem:[#allocation2 + $0x62] sm:$0xff]  ;;  %6525 = vst [vmem:[#allocation11_spill] sm:$0xff] %v5672_v10  ;;  %v5674_v11 = vld [vmem:[#allocation2 + $0x6a] sm:$0xff] }
  0x3f   : > { %4597 = vmatprep.mubr.msk.f32.mxu1 %vm198_vm1, %v5542_v43  ;;  %4794 = vmatprep.mubr.msk.f32.mxu0 %vm198_vm1, %v5542_v43  ;;  %6526 = vst [vmem:[#allocation12_spill] sm:$0xff] %v5676_v12  ;;  %v5678_v13 = vld [vmem:[#allocation2 + $0x7a] sm:$0xff]  ;;  %v5690_v15 = vld [vmem:[#allocation2 + $0x82] sm:$0xff]  ;;  %v5692_v16 = vld [vmem:[#allocation2 + $0x151] sm:$0xff] }
  0x40   : > { %v5688_v14 = vld [vmem:[#allocation2 + $0x141] sm:$0xff]  ;;  %6528 = vst [vmem:[#allocation14_spill] sm:$0xff] %v5692_v16  ;;  %v5694_v17 = vld [vmem:[#allocation2 + $0x92] sm:$0xff]  ;;  %v5708_v20 = vld [vmem:[#allocation2 + $0x169] sm:$0xff] }
  0x41   : > { %6527 = vst [vmem:[#allocation13_spill] sm:$0xff] %v5688_v14  ;;  %v5704_v18 = vld [vmem:[#allocation2 + $0x159] sm:$0xff]  ;;  %6530 = vst [vmem:[#allocation16_spill] sm:$0xff] %v5708_v20  ;;  %v5710_v21 = vld [vmem:[#allocation2 + $0xaa] sm:$0xff] }
  0x42   : > { %4598 = vmatmul.mubr.msk.f32.gmra.mrb[10].mxu1 %vm198_vm1, %v5560_v48  ;;  %4795 = vmatmul.mubr.msk.f32.gmra.mrb[8].mxu0 %vm198_vm1, %v5560_v48  ;;  %6529 = vst [vmem:[#allocation15_spill] sm:$0xff] %v5704_v18  ;;  %v5706_v19 = vld [vmem:[#allocation2 + $0x9a] sm:$0xff]  ;;  %v5720_v22 = vld [vmem:[#allocation2 + $0x171] sm:$0xff]  ;;  %v5724_v25 = vld [vmem:[#allocation2 + $0xc2] sm:$0xff] }
  0x43   : > { %4600 = vmatprep.mubr.msk.f32.mxu1 %vm198_vm1, %v5563_v49  ;;  %4797 = vmatprep.mubr.msk.f32.mxu0 %vm198_vm1, %v5563_v49  ;;  %6531 = vst [vmem:[#allocation17_spill] sm:$0xff] %v5720_v22  ;;  %v5722_v23 = vld [vmem:[#allocation2 + $0xb2] sm:$0xff]  ;;  %v319_v24 = vld [vmem:[#allocation2] sm:$0xff]  ;;  %v320_v26 = vld [vmem:[#allocation2 + $0x8] sm:$0xff] }
  0x44   : > { %v5733_v27 = vld [vmem:[#allocation2 + $0xca] sm:$0xff]  ;;  %v5735_v28 = vld [vmem:[#allocation2 + $0x18] sm:$0xff]  ;;  %v5751_v31 = vld [vmem:[#allocation2 + $0x20] sm:$0xff] }
  0x45   : > { %6532 = vst [vmem:[#allocation18_spill] sm:$0xff] %v5735_v28  ;;  %v5737_v29 = vld [vmem:[#allocation2 + $0xda] sm:$0xff]  ;;  %v5745_v30 = vld [vmem:[%s6467_s1 + $0xc] sm:$0xf]  ;;  %6533 = vst [vmem:[#allocation19_spill] sm:$0xff] %v5751_v31 }
  0x46   : > { %4601 = vmatmul.mubr.msk.f32.gmra.mrb[12].mxu1 %vm198_vm1, %v5573_v50  ;;  %4798 = vmatmul.mubr.msk.f32.gmra.mrb[10].mxu0 %vm198_vm1, %v5573_v50  ;;  %v5757_v38 = vld [vmem:[#allocation2 + $0x30] sm:$0xff]  ;;  %v5773_v40 = vld [vmem:[#allocation2 + $0xfa] sm:$0xff]  ;;  %v5775_v42 = vld [vmem:[#allocation2 + $0x48] sm:$0xff] }
  0x47   : > { %4603 = vmatprep.mubr.msk.f32.mxu1 %vm198_vm1, %v5575_v51  ;;  %4800 = vmatprep.mubr.msk.f32.mxu0 %vm198_vm1, %v5575_v51  ;;  %6534 = vst [vmem:[#allocation20_spill] sm:$0xff] %v5757_v38  ;;  %v5759_v39 = vld [vmem:[#allocation2 + $0xf2] sm:$0xff]  ;;  %6536 = vst [vmem:[#allocation22_spill] sm:$0xff] %v5775_v42  ;;  %v5777_v44 = vld [vmem:[#allocation2 + $0x10a] sm:$0xff] }
  0x48   : > { %v5787_v45 = vld [vmem:[#allocation2 + $0x50] sm:$0xff]  ;;  %v5791_v47 = vld [vmem:[#allocation2 + $0x60] sm:$0xff]  ;;  %v5803_v58 = vld [vmem:[#allocation2 + $0x68] sm:$0xff] }
  0x49   : > { %6537 = vst [vmem:[#allocation23_spill] sm:$0xff] %v5787_v45  ;;  %v5789_v46 = vld [vmem:[#allocation2 + $0x112] sm:$0xff]  ;;  %6538 = vst [vmem:[#allocation24_spill] sm:$0xff] %v5791_v47  ;;  %v5793_v57 = vld [vmem:[#allocation2 + $0x122] sm:$0xff] }
  0x4a   : > { %4604 = vmatmul.mubr.msk.f32.gmra.mrb[14].mxu1 %vm198_vm1, %v5585_v52  ;;  %4801 = vmatmul.mubr.msk.f32.gmra.mrb[12].mxu0 %vm198_vm1, %v5585_v52  ;;  %6539 = vst [vmem:[#allocation25_spill] sm:$0xff] %v5803_v58 }
  0x4b   : > { %4606 = vmatprep.mubr.msk.f32.mxu1 %vm198_vm1, %v5587_v53  ;;  %4803 = vmatprep.mubr.msk.f32.mxu0 %vm198_vm1, %v5587_v53 }
  0x4e   : > { %4607 = vmatmul.mubr.msk.f32.gmra.mrb[16].mxu1 %vm198_vm1, %v5597_v54  ;;  %4804 = vmatmul.mubr.msk.f32.gmra.mrb[14].mxu0 %vm198_vm1, %v5597_v54  ;;  %v5881_v54 = vld [vmem:[#allocation2 + $0xe0] sm:$0xff] }
  0x4f   : > { %4609 = vmatprep.mubr.msk.f32.mxu1 %vm198_vm1, %v5601_v56  ;;  %4832 = vmatprep.mubr.msk.f32.mxu0 %vm198_vm1, %v5599_v55  ;;  %v5869_v56 = vld [vmem:[#allocation2 + $0x18a] sm:$0xff] }
  0x50   : > { %6547 = vst [vmem:[#allocation33_spill] sm:$0xff] %v5869_v56 }
  0x52   : > { %4610 = vmatmul.mubr.msk.f32.gmra.mrb[18].mxu1 %vm198_vm1, %v5615_v59  ;;  %4833 = vmatmul.mubr.msk.f32.vlgmr.msra.gmra.mrb[0].mxu0 %vm198_vm1, %v5617_v60  ;;  %v5857_v59 = vld [vmem:[#allocation2 + $0x182] sm:$0xff] }
  0x53   : > { %4881 = vmatpush3.msk.msra.mxu0 %vm482_vm0, %v5497_v33  ;;  %4612 = vmatprep.mubr.msk.f32.mxu1 %vm198_vm1, %v5619_v61  ;;  %v5753_v33 = vld [vmem:[#allocation2 + $0xe2] sm:$0xff]  ;;  %6546 = vst [vmem:[#allocation32_spill] sm:$0xff] %v5857_v59 }
  0x54   : > { %4835 = vmatprep.mubr.msk.f32.mxu0 %vm198_vm1, %v5621_v62  ;;  %4930 = vmatprep.subr.msk.mxu0 %vm482_vm0, %v5626_v63  ;;  %v5855_v61 = vld [vmem:[#allocation2 + $0xc0] sm:$0xff] }
  0x56   : > { %4613 = vmatmul.mubr.msk.f32.gmra.mrb[20].mxu1 %vm198_vm1, %v5636_v0  ;;  %4836 = vmatmul.mubr.msk.f32.gmra.mrb[2].mxu0 %vm198_vm1, %v5638_v1  ;;  %v5853_v0 = vld [vmem:[#allocation2 + $0x172] sm:$0xff] }
  0x57   : > { %4615 = vmatprep.mubr.msk.f32.mxu1 %vm198_vm1, %v5642_v3  ;;  %4838 = vmatprep.mubr.msk.f32.mxu0 %vm198_vm1, %v5644_v4  ;;  %v5851_v3 = vld [vmem:[#allocation2 + $0xb0] sm:$0xff]  ;;  %6545 = vst [vmem:[#allocation31_spill] sm:$0xff] %v5853_v0 }
  0x58   : > { %6544 = vst [vmem:[#allocation30_spill] sm:$0xff] %v5851_v3 }
  0x5a   : > { %4616 = vmatmul.mubr.msk.f32.gmra.mrb[22].mxu1 %vm198_vm1, %v5656_v5  ;;  %4839 = vmatmul.mubr.msk.f32.gmra.mrb[4].mxu0 %vm198_vm1, %v5658_v6  ;;  %v5841_v5 = vld [vmem:[#allocation2 + $0x16a] sm:$0xff] }
  0x5b   : > { %4618 = vmatprep.mubr.msk.f32.mxu1 %vm198_vm1, %v5660_v7  ;;  %4841 = vmatprep.mubr.msk.f32.mxu0 %vm198_vm1, %v5662_v9  ;;  %v5839_v7 = vld [vmem:[#allocation2 + $0xa8] sm:$0xff] }
  0x5e   : > { %4619 = vmatmul.mubr.msk.f32.gmra.mrb[24].mxu1 %vm198_vm1, %v5672_v10  ;;  %4842 = vmatmul.mubr.msk.f32.gmra.mrb[6].mxu0 %vm198_vm1, %v5674_v11  ;;  %v5837_v10 = vld [vmem:[#allocation2 + $0x15a] sm:$0xff] }
  0x5f   : > { %4621 = vmatprep.mubr.msk.f32.mxu1 %vm198_vm1, %v5676_v12  ;;  %4844 = vmatprep.mubr.msk.f32.mxu0 %vm198_vm1, %v5678_v13  ;;  %v5835_v12 = vld [vmem:[#allocation2 + $0x98] sm:$0xff] }
  0x60   : > { %6543 = vst [vmem:[#allocation29_spill] sm:$0xff] %v5835_v12 }
  0x62   : > { %4622 = vmatmul.mubr.msk.f32.gmra.mrb[26].mxu1 %vm198_vm1, %v5688_v14  ;;  %4845 = vmatmul.mubr.msk.f32.gmra.mrb[8].mxu0 %vm198_vm1, %v5690_v15  ;;  %v5825_v14 = vld [vmem:[#allocation2 + $0x152] sm:$0xff] }
  0x63   : > { %4624 = vmatprep.mubr.msk.f32.mxu1 %vm198_vm1, %v5692_v16  ;;  %4847 = vmatprep.mubr.msk.f32.mxu0 %vm198_vm1, %v5694_v17  ;;  %v5823_v16 = vld [vmem:[#allocation2 + $0x90] sm:$0xff] }
  0x64   : > { %6542 = vst [vmem:[#allocation28_spill] sm:$0xff] %v5823_v16 }
  0x66   : > { %4625 = vmatmul.mubr.msk.f32.gmra.mrb[28].mxu1 %vm198_vm1, %v5704_v18  ;;  %4848 = vmatmul.mubr.msk.f32.gmra.mrb[10].mxu0 %vm198_vm1, %v5706_v19  ;;  %v5821_v18 = vld [vmem:[#allocation2 + $0x142] sm:$0xff] }
  0x67   : > { %4627 = vmatprep.mubr.msk.f32.mxu1 %vm198_vm1, %v5708_v20  ;;  %4850 = vmatprep.mubr.msk.f32.mxu0 %vm198_vm1, %v5710_v21  ;;  %v5819_v20 = vld [vmem:[#allocation2 + $0x80] sm:$0xff] }
  0x68   : > { %6541 = vst [vmem:[#allocation27_spill] sm:$0xff] %v5819_v20 }
  0x6a   : > { %4628 = vmatmul.mubr.msk.f32.gmra.mrb[30].mxu1 %vm198_vm1, %v5720_v22  ;;  %4851 = vmatmul.mubr.msk.f32.gmra.mrb[12].mxu0 %vm198_vm1, %v5722_v23  ;;  %v5809_v22 = vld [vmem:[#allocation2 + $0x13a] sm:$0xff] }
  0x6b   : > { %4632 = vmatprep.mubr.msk.f32.mxu1 %vm198_vm1, %v319_v24  ;;  %4853 = vmatprep.mubr.msk.f32.mxu0 %vm198_vm1, %v5724_v25  ;;  %v5805_v24 = vld [vmem:[#allocation2 + $0x12a] sm:$0xff] }
  0x6e   : > { %4633 = vmatmul.mubr.msk.f32.vlgmr.msra.gmra.mrb[0].mxu1 %vm198_vm1, %v320_v26  ;;  %4854 = vmatmul.mubr.msk.f32.gmra.mrb[14].mxu0 %vm198_vm1, %v5733_v27  ;;  %v5807_v26 = vld [vmem:[#allocation2 + $0x78] sm:$0xff] }
  0x6f   : > { %4635 = vmatprep.mubr.msk.f32.mxu1 %vm198_vm1, %v5735_v28  ;;  %4856 = vmatprep.mubr.msk.f32.mxu0 %vm198_vm1, %v5737_v29  ;;  %6540 = vst [vmem:[#allocation26_spill] sm:$0xff] %v5807_v26  ;;  %v5871_v28 = vld [vmem:[#allocation2 + $0xd8] sm:$0xff] }
  0x70   : > { %4681 = vmatpush3.msk.msra.mxu1 %vm482_vm0, %v5442_v8  ;;  %v5771_v8 = vld [vmem:[#allocation2 + $0x38] sm:$0xff] }
  0x71   : > { %4730 = vmatprep.subr.msk.mxu1 %vm482_vm0, %v5745_v30  ;;  %6535 = vst [vmem:[#allocation21_spill] sm:$0xff] %v5771_v8 }
  0x72   : > { %4636 = vmatmul.mubr.msk.f32.gmra.mrb[2].mxu1 %vm198_vm1, %v5751_v31  ;;  %4857 = vmatmul.mubr.msk.f32.gmra.mrb[16].mxu0 %vm198_vm1, %v5753_v33  ;;  %v5867_v31 = vld [vmem:[#allocation2 + $0xc8] sm:$0xff] }
  0x73   : > { %4638 = vmatprep.mubr.msk.f32.mxu1 %vm198_vm1, %v5757_v38  ;;  %4859 = vmatprep.mubr.msk.f32.mxu0 %vm198_vm1, %v5759_v39 }
  0x76   : > { %4639 = vmatmul.mubr.msk.f32.gmra.mrb[4].mxu1 %vm198_vm1, %v5771_v8  ;;  %4860 = vmatmul.mubr.msk.f32.gmra.mrb[18].mxu0 %vm198_vm1, %v5773_v40 }
  0x77   : > { %4641 = vmatprep.mubr.msk.f32.mxu1 %vm198_vm1, %v5775_v42  ;;  %4862 = vmatprep.mubr.msk.f32.mxu0 %vm198_vm1, %v5777_v44 }
  0x7a   : > { %4642 = vmatmul.mubr.msk.f32.gmra.mrb[6].mxu1 %vm198_vm1, %v5787_v45  ;;  %4863 = vmatmul.mubr.msk.f32.gmra.mrb[20].mxu0 %vm198_vm1, %v5789_v46 }
  0x7b   : > { %4644 = vmatprep.mubr.msk.f32.mxu1 %vm198_vm1, %v5791_v47  ;;  %4865 = vmatprep.mubr.msk.f32.mxu0 %vm198_vm1, %v5793_v57 }
  0x7e   : > { %4645 = vmatmul.mubr.msk.f32.gmra.mrb[8].mxu1 %vm198_vm1, %v5803_v58  ;;  %4866 = vmatmul.mubr.msk.f32.gmra.mrb[22].mxu0 %vm198_vm1, %v5805_v24 }
  0x7f   : > { %4647 = vmatprep.mubr.msk.f32.mxu1 %vm198_vm1, %v5807_v26  ;;  %4868 = vmatprep.mubr.msk.f32.mxu0 %vm198_vm1, %v5809_v22 }
  0x82   : > { %4648 = vmatmul.mubr.msk.f32.gmra.mrb[10].mxu1 %vm198_vm1, %v5819_v20  ;;  %4869 = vmatmul.mubr.msk.f32.gmra.mrb[24].mxu0 %vm198_vm1, %v5821_v18 }
  0x83   : > { %4650 = vmatprep.mubr.msk.f32.mxu1 %vm198_vm1, %v5823_v16  ;;  %4871 = vmatprep.mubr.msk.f32.mxu0 %vm198_vm1, %v5825_v14 }
  0x86   : > { %4651 = vmatmul.mubr.msk.f32.gmra.mrb[12].mxu1 %vm198_vm1, %v5835_v12  ;;  %4872 = vmatmul.mubr.msk.f32.gmra.mrb[26].mxu0 %vm198_vm1, %v5837_v10 }
  0x87   : > { %4653 = vmatprep.mubr.msk.f32.mxu1 %vm198_vm1, %v5839_v7  ;;  %4874 = vmatprep.mubr.msk.f32.mxu0 %vm198_vm1, %v5841_v5 }
  0x8a   : > { %4654 = vmatmul.mubr.msk.f32.gmra.mrb[14].mxu1 %vm198_vm1, %v5851_v3  ;;  %4875 = vmatmul.mubr.msk.f32.gmra.mrb[28].mxu0 %vm198_vm1, %v5853_v0  ;;  %v5888_v0 = vld [vmem:[%s6467_s1 + $0x20] sm:$0xf] }
  0x8b   : > { %4656 = vmatprep.mubr.msk.f32.mxu1 %vm198_vm1, %v5855_v61  ;;  %4877 = vmatprep.mubr.msk.f32.mxu0 %vm198_vm1, %v5857_v59  ;;  %v5883_v59 = vld [vmem:[#allocation2 + $0xf0] sm:$0xff] }
  0x8e   : > { %4657 = vmatmul.mubr.msk.f32.gmra.mrb[16].mxu1 %vm198_vm1, %v5867_v31  ;;  %4878 = vmatmul.mubr.msk.f32.gmra.mrb[30].mxu0 %vm198_vm1, %v5869_v56  ;;  %v5898_v56 = vld [vmem:[#allocation2 + $0xf8] sm:$0xff] }
  0x8f   : > { %4659 = vmatprep.mubr.msk.f32.mxu1 %vm198_vm1, %v5871_v28  ;;  %4882 = vmatprep.mubr.msk.f32.mxu0 %vm198_vm1, %v5757_v38  ;;  %v5902_v38 = vld [vmem:[#allocation2 + $0x108] sm:$0xff] }
  0x92   : > { %4660 = vmatmul.mubr.msk.f32.gmra.mrb[18].mxu1 %vm198_vm1, %v5881_v54  ;;  %4883 = vmatmul.mubr.msk.f32.vlgmr.msra.gmra.mrb[0].mxu0 %vm198_vm1, %v5771_v8  ;;  %v5928_v8 = vld [vmem:[#allocation2 + $0x138] sm:$0xff] }
  0x93   : > { %4931 = vmatpush3.msk.msra.mxu0 %vm482_vm0, %v5626_v63  ;;  %4662 = vmatprep.mubr.msk.f32.mxu1 %vm198_vm1, %v5883_v59  ;;  %v5914_v63 = vld [vmem:[#allocation2 + $0x110] sm:$0xff] }
  0x94   : > { %4885 = vmatprep.mubr.msk.f32.mxu0 %vm198_vm1, %v5775_v42  ;;  %4980 = vmatprep.subr.msk.mxu0 %vm482_vm0, %v5888_v0  ;;  %v5916_v42 = vld [vmem:[#allocation2 + $0x120] sm:$0xff] }
  0x96   : > { %4663 = vmatmul.mubr.msk.f32.gmra.mrb[20].mxu1 %vm198_vm1, %v5898_v56  ;;  %4886 = vmatmul.mubr.msk.f32.gmra.mrb[2].mxu0 %vm198_vm1, %v5787_v45  ;;  %v5926_v45 = vld [vmem:[#allocation2 + $0x128] sm:$0xff] }
  0x97   : > { %4665 = vmatprep.mubr.msk.f32.mxu1 %vm198_vm1, %v5902_v38  ;;  %4888 = vmatprep.mubr.msk.f32.mxu0 %vm198_vm1, %v5791_v47  ;;  %v5940_v47 = vld [vmem:[#allocation2 + $0x150] sm:$0xff] }
  0x9a   : > { %4666 = vmatmul.mubr.msk.f32.gmra.mrb[22].mxu1 %vm198_vm1, %v5914_v63  ;;  %4889 = vmatmul.mubr.msk.f32.gmra.mrb[4].mxu0 %vm198_vm1, %v5803_v58  ;;  %v5938_v58 = vld [vmem:[#allocation2 + $0x140] sm:$0xff] }
  0x9b   : > { %4668 = vmatprep.mubr.msk.f32.mxu1 %vm198_vm1, %v5916_v42  ;;  %4891 = vmatprep.mubr.msk.f32.mxu0 %vm198_vm1, %v5807_v26  ;;  %v5952_v26 = vld [vmem:[#allocation2 + $0x168] sm:$0xff] }
  0x9e   : > { %4669 = vmatmul.mubr.msk.f32.gmra.mrb[24].mxu1 %vm198_vm1, %v5926_v45  ;;  %4892 = vmatmul.mubr.msk.f32.gmra.mrb[6].mxu0 %vm198_vm1, %v5819_v20  ;;  %v5950_v20 = vld [vmem:[#allocation2 + $0x158] sm:$0xff] }
  0x9f   : > { %4671 = vmatprep.mubr.msk.f32.mxu1 %vm198_vm1, %v5928_v8  ;;  %4894 = vmatprep.mubr.msk.f32.mxu0 %vm198_vm1, %v5823_v16  ;;  %v1035_v16 = vld [vmem:[#allocation2 + $0x2] sm:$0xff] }
  0xa2   : > { %4672 = vmatmul.mubr.msk.f32.gmra.mrb[26].mxu1 %vm198_vm1, %v5938_v58  ;;  %4895 = vmatmul.mubr.msk.f32.gmra.mrb[8].mxu0 %vm198_vm1, %v5835_v12  ;;  %v5962_v12 = vld [vmem:[#allocation2 + $0x170] sm:$0xff] }
  0xa3   : > { %4674 = vmatprep.mubr.msk.f32.mxu1 %vm198_vm1, %v5940_v47  ;;  %4897 = vmatprep.mubr.msk.f32.mxu0 %vm198_vm1, %v5839_v7 }
  0xa6   : > { %4675 = vmatmul.mubr.msk.f32.gmra.mrb[28].mxu1 %vm198_vm1, %v5950_v20  ;;  %4898 = vmatmul.mubr.msk.f32.gmra.mrb[10].mxu0 %vm198_vm1, %v5851_v3  ;;  %v1036_v3 = vld [vmem:[#allocation2 + $0xa] sm:$0xff] }
  0xa7   : > { %4677 = vmatprep.mubr.msk.f32.mxu1 %vm198_vm1, %v5952_v26  ;;  %4900 = vmatprep.mubr.msk.f32.mxu0 %vm198_vm1, %v5855_v61 }
  0xaa   : > { %4678 = vmatmul.mubr.msk.f32.gmra.mrb[30].mxu1 %vm198_vm1, %v5962_v12  ;;  %4901 = vmatmul.mubr.msk.f32.gmra.mrb[12].mxu0 %vm198_vm1, %v5867_v31 }
  0xab   : > { %4682 = vmatprep.mubr.msk.f32.mxu1 %vm198_vm1, %v1035_v16  ;;  %4903 = vmatprep.mubr.msk.f32.mxu0 %vm198_vm1, %v5871_v28  ;;  %v2627_v16 = vld [vmem:[#allocation2 + $0x1a0] sm:$0xff] }
  0xae   : > { %4683 = vmatmul.mubr.msk.f32.vlgmr.msra.gmra.mrb[0].mxu1 %vm198_vm1, %v1036_v3  ;;  %4904 = vmatmul.mubr.msk.f32.gmra.mrb[14].mxu0 %vm198_vm1, %v5881_v54  ;;  %v2626_v3 = vld [vmem:[#allocation2 + $0x198] sm:$0xff] }
  0xaf   : > { %4685 = vmatprep.mubr.msk.f32.mxu1 %vm198_vm1, %v5599_v55  ;;  %4906 = vmatprep.mubr.msk.f32.mxu0 %vm198_vm1, %v5883_v59  ;;  %v6022_v55 = vld [vmem:[#allocation2 + $0x180] sm:$0xff] }
  0xb0   : > { %4731 = vmatpush3.msk.msra.mxu1 %vm482_vm0, %v5745_v30  ;;  %v6562_v30 = vld [vmem:[#allocation24_spill] sm:$0xff] }
  0xb1   : > { %5030 = vmatprep.subr.msk.mxu1 %vm482_vm0, %v5403_v2 }
  0xb2   : > { %4686 = vmatmul.mubr.msk.f32.gmra.mrb[2].mxu1 %vm198_vm1, %v5617_v60  ;;  %4907 = vmatmul.mubr.msk.f32.gmra.mrb[16].mxu0 %vm198_vm1, %v5898_v56  ;;  %v6032_v60 = vld [vmem:[#allocation2 + $0x188] sm:$0xff] }
  0xb3   : > { %4688 = vmatprep.mubr.msk.f32.mxu1 %vm198_vm1, %v5621_v62  ;;  %4909 = vmatprep.mubr.msk.f32.mxu0 %vm198_vm1, %v5902_v38 }
  0xb6   : > { %4689 = vmatmul.mubr.msk.f32.gmra.mrb[4].mxu1 %vm198_vm1, %v5638_v1  ;;  %4910 = vmatmul.mubr.msk.f32.gmra.mrb[18].mxu0 %vm198_vm1, %v5914_v63 }
  0xb7   : > { %4691 = vmatprep.mubr.msk.f32.mxu1 %vm198_vm1, %v5644_v4  ;;  %4912 = vmatprep.mubr.msk.f32.mxu0 %vm198_vm1, %v5916_v42 }
  0xba   : > { %4692 = vmatmul.mubr.msk.f32.gmra.mrb[6].mxu1 %vm198_vm1, %v5658_v6  ;;  %4913 = vmatmul.mubr.msk.f32.gmra.mrb[20].mxu0 %vm198_vm1, %v5926_v45 }
  0xbb   : > { %4694 = vmatprep.mubr.msk.f32.mxu1 %vm198_vm1, %v5662_v9  ;;  %4915 = vmatprep.mubr.msk.f32.mxu0 %vm198_vm1, %v5928_v8 }
  0xbe   : > { %4695 = vmatmul.mubr.msk.f32.gmra.mrb[8].mxu1 %vm198_vm1, %v5674_v11  ;;  %4916 = vmatmul.mubr.msk.f32.gmra.mrb[22].mxu0 %vm198_vm1, %v5938_v58 }
  0xbf   : > { %4697 = vmatprep.mubr.msk.f32.mxu1 %vm198_vm1, %v5678_v13  ;;  %4918 = vmatprep.mubr.msk.f32.mxu0 %vm198_vm1, %v5940_v47 }
  0xc2   : > { %4698 = vmatmul.mubr.msk.f32.gmra.mrb[10].mxu1 %vm198_vm1, %v5690_v15  ;;  %4919 = vmatmul.mubr.msk.f32.gmra.mrb[24].mxu0 %vm198_vm1, %v5950_v20 }
  0xc3   : > { %4700 = vmatprep.mubr.msk.f32.mxu1 %vm198_vm1, %v5694_v17  ;;  %4921 = vmatprep.mubr.msk.f32.mxu0 %vm198_vm1, %v5952_v26 }
  0xc6   : > { %4701 = vmatmul.mubr.msk.f32.gmra.mrb[12].mxu1 %vm198_vm1, %v5706_v19  ;;  %4922 = vmatmul.mubr.msk.f32.gmra.mrb[26].mxu0 %vm198_vm1, %v5962_v12 }
  0xc7   : > { %4703 = vmatprep.mubr.msk.f32.mxu1 %vm198_vm1, %v5710_v21  ;;  %4924 = vmatprep.mubr.msk.f32.mxu0 %vm198_vm1, %v6022_v55 }
  0xca   : > { %4704 = vmatmul.mubr.msk.f32.gmra.mrb[14].mxu1 %vm198_vm1, %v5722_v23  ;;  %4925 = vmatmul.mubr.msk.f32.gmra.mrb[28].mxu0 %vm198_vm1, %v6032_v60 }
  0xcb   : > { %4706 = vmatprep.mubr.msk.f32.mxu1 %vm198_vm1, %v5724_v25  ;;  %4927 = vmatprep.mubr.msk.f32.mxu0 %vm198_vm1, %v2626_v3  ;;  %v6564_v3 = vld [vmem:[#allocation25_spill] sm:$0xff] }
  0xce   : > { %4707 = vmatmul.mubr.msk.f32.gmra.mrb[16].mxu1 %vm198_vm1, %v5733_v27  ;;  %4928 = vmatmul.mubr.msk.f32.gmra.mrb[30].mxu0 %vm198_vm1, %v2627_v16  ;;  %v6565_v16 = vld [vmem:[#allocation11_spill] sm:$0xff] }
  0xcf   : > { %4709 = vmatprep.mubr.msk.f32.mxu1 %vm198_vm1, %v5737_v29  ;;  %4932 = vmatprep.mubr.msk.f32.mxu0 %vm198_vm1, %v5487_v32  ;;  %v6548_v32 = vld [vmem:[#allocation31_spill] sm:$0xff] }
  0xd2   : > { %4710 = vmatmul.mubr.msk.f32.gmra.mrb[18].mxu1 %vm198_vm1, %v5753_v33  ;;  %4933 = vmatmul.mubr.msk.f32.vlgmr.msra.gmra.mrb[0].mxu0 %vm198_vm1, %v5505_v34  ;;  %v6549_v34 = vld [vmem:[#allocation3_spill] sm:$0xff] }
  0xd3   : > { %4981 = vmatpush3.msk.msra.mxu0 %vm482_vm0, %v5888_v0  ;;  %4712 = vmatprep.mubr.msk.f32.mxu1 %vm198_vm1, %v5759_v39  ;;  %v6561_v0 = vld [vmem:[#allocation9_spill] sm:$0xff] }
  0xd4   : > { %4935 = vmatprep.mubr.msk.f32.mxu0 %vm198_vm1, %v5509_v35  ;;  %v6550_v35 = vld [vmem:[#allocation18_spill] sm:$0xff] }
  0xd6   : > { %4713 = vmatmul.mubr.msk.f32.gmra.mrb[20].mxu1 %vm198_vm1, %v5773_v40  ;;  %4936 = vmatmul.mubr.msk.f32.gmra.mrb[2].mxu0 %vm198_vm1, %v5521_v36  ;;  %v6551_v36 = vld [vmem:[#allocation4_spill] sm:$0xff] }
  0xd7   : > { %4715 = vmatprep.mubr.msk.f32.mxu1 %vm198_vm1, %v5777_v44  ;;  %4938 = vmatprep.mubr.msk.f32.mxu0 %vm198_vm1, %v5523_v37  ;;  %v6552_v37 = vld [vmem:[#allocation19_spill] sm:$0xff] }
  0xda   : > { %4716 = vmatmul.mubr.msk.f32.gmra.mrb[22].mxu1 %vm198_vm1, %v5789_v46  ;;  %4939 = vmatmul.mubr.msk.f32.gmra.mrb[4].mxu0 %vm198_vm1, %v5537_v41  ;;  %v6553_v41 = vld [vmem:[#allocation5_spill] sm:$0xff] }
  0xdb   : > { %4718 = vmatprep.mubr.msk.f32.mxu1 %vm198_vm1, %v5793_v57  ;;  %4941 = vmatprep.mubr.msk.f32.mxu0 %vm198_vm1, %v5542_v43  ;;  %v6554_v43 = vld [vmem:[#allocation20_spill] sm:$0xff] }
  0xde   : > { %4719 = vmatmul.mubr.msk.f32.gmra.mrb[24].mxu1 %vm198_vm1, %v5805_v24  ;;  %4942 = vmatmul.mubr.msk.f32.gmra.mrb[6].mxu0 %vm198_vm1, %v5560_v48  ;;  %v6555_v48 = vld [vmem:[#allocation6_spill] sm:$0xff] }
  0xdf   : > { %4721 = vmatprep.mubr.msk.f32.mxu1 %vm198_vm1, %v5809_v22  ;;  %4944 = vmatprep.mubr.msk.f32.mxu0 %vm198_vm1, %v5563_v49  ;;  %v6556_v49 = vld [vmem:[#allocation21_spill] sm:$0xff] }
  0xe2   : > { %4722 = vmatmul.mubr.msk.f32.gmra.mrb[26].mxu1 %vm198_vm1, %v5821_v18  ;;  %4945 = vmatmul.mubr.msk.f32.gmra.mrb[8].mxu0 %vm198_vm1, %v5573_v50  ;;  %v6557_v50 = vld [vmem:[#allocation7_spill] sm:$0xff] }
  0xe3   : > { %4724 = vmatprep.mubr.msk.f32.mxu1 %vm198_vm1, %v5825_v14  ;;  %4947 = vmatprep.mubr.msk.f32.mxu0 %vm198_vm1, %v5575_v51  ;;  %v6558_v51 = vld [vmem:[#allocation22_spill] sm:$0xff] }
  0xe6   : > { %4725 = vmatmul.mubr.msk.f32.gmra.mrb[28].mxu1 %vm198_vm1, %v5837_v10  ;;  %4948 = vmatmul.mubr.msk.f32.gmra.mrb[10].mxu0 %vm198_vm1, %v5585_v52  ;;  %v6559_v52 = vld [vmem:[#allocation8_spill] sm:$0xff] }
  0xe7   : > { %4727 = vmatprep.mubr.msk.f32.mxu1 %vm198_vm1, %v5841_v5  ;;  %4950 = vmatprep.mubr.msk.f32.mxu0 %vm198_vm1, %v5587_v53  ;;  %v6560_v53 = vld [vmem:[#allocation23_spill] sm:$0xff] }
  0xea   : > { %4728 = vmatmul.mubr.msk.f32.gmra.mrb[30].mxu1 %vm198_vm1, %v6548_v32  ;;  %4951 = vmatmul.mubr.msk.f32.gmra.mrb[12].mxu0 %vm198_vm1, %v6549_v34  ;;  %v6566_v34 = vld [vmem:[#allocation26_spill] sm:$0xff] }
  0xeb   : > { %4732 = vmatprep.mubr.msk.f32.mxu1 %vm198_vm1, %v6550_v35  ;;  %4953 = vmatprep.mubr.msk.f32.mxu0 %vm198_vm1, %v6551_v36  ;;  %v6567_v35 = vld [vmem:[#allocation12_spill] sm:$0xff] }
  0xee   : > { %4733 = vmatmul.mubr.msk.f32.vlgmr.msra.gmra.mrb[0].mxu1 %vm198_vm1, %v6552_v37  ;;  %4954 = vmatmul.mubr.msk.f32.gmra.mrb[14].mxu0 %vm198_vm1, %v6553_v41  ;;  %v6568_v37 = vld [vmem:[#allocation27_spill] sm:$0xff] }
  0xef   : > { %4735 = vmatprep.mubr.msk.f32.mxu1 %vm198_vm1, %v6554_v43  ;;  %4956 = vmatprep.mubr.msk.f32.mxu0 %vm198_vm1, %v6555_v48  ;;  %v6569_v43 = vld [vmem:[#allocation13_spill] sm:$0xff] }
  0xf0   : > { %5031 = vmatpush3.msk.msra.mxu1 %vm482_vm0, %v5403_v2  ;;  %v6563_v2 = vld [vmem:[#allocation10_spill] sm:$0xff] }
  0xf2   : > { %4736 = vmatmul.mubr.msk.f32.gmra.mrb[2].mxu1 %vm198_vm1, %v6556_v49  ;;  %4957 = vmatmul.mubr.msk.f32.gmra.mrb[16].mxu0 %vm198_vm1, %v6557_v50  ;;  %v6570_v49 = vld [vmem:[#allocation28_spill] sm:$0xff] }
  0xf3   : > { %4738 = vmatprep.mubr.msk.f32.mxu1 %vm198_vm1, %v6558_v51  ;;  %4959 = vmatprep.mubr.msk.f32.mxu0 %vm198_vm1, %v6559_v52  ;;  %v6571_v51 = vld [vmem:[#allocation14_spill] sm:$0xff] }
  0xf6   : > { %4739 = vmatmul.mubr.msk.f32.gmra.mrb[4].mxu1 %vm198_vm1, %v6560_v53  ;;  %4960 = vmatmul.mubr.msk.f32.gmra.mrb[18].mxu0 %vm198_vm1, %v6561_v0  ;;  %v6572_v53 = vld [vmem:[#allocation29_spill] sm:$0xff] }
  0xf7   : > { %4741 = vmatprep.mubr.msk.f32.mxu1 %vm198_vm1, %v6562_v30  ;;  %4962 = vmatprep.mubr.msk.f32.mxu0 %vm198_vm1, %v6563_v2  ;;  %v6573_v30 = vld [vmem:[#allocation15_spill] sm:$0xff] }
  0xfa   : > { %4742 = vmatmul.mubr.msk.f32.gmra.mrb[6].mxu1 %vm198_vm1, %v6564_v3  ;;  %4963 = vmatmul.mubr.msk.f32.gmra.mrb[20].mxu0 %vm198_vm1, %v6565_v16  ;;  %v6574_v3 = vld [vmem:[#allocation16_spill] sm:$0xff] }
  0xfb   : > { %4744 = vmatprep.mubr.msk.f32.mxu1 %vm198_vm1, %v6566_v34  ;;  %4965 = vmatprep.mubr.msk.f32.mxu0 %vm198_vm1, %v6567_v35  ;;  %v6156_v34 = vld [vmem:[#allocation2 + $0x181] sm:$0xff] }
  0xfe   : > { %4745 = vmatmul.mubr.msk.f32.gmra.mrb[8].mxu1 %vm198_vm1, %v6568_v37  ;;  %4966 = vmatmul.mubr.msk.f32.gmra.mrb[22].mxu0 %vm198_vm1, %v6569_v43  ;;  %v6575_v37 = vld [vmem:[#allocation30_spill] sm:$0xff] }
  0xff   : > { %4747 = vmatprep.mubr.msk.f32.mxu1 %vm198_vm1, %v6570_v49  ;;  %4968 = vmatprep.mubr.msk.f32.mxu0 %vm198_vm1, %v6571_v51  ;;  %v6576_v49 = vld [vmem:[#allocation17_spill] sm:$0xff] }
 0x102   : > { %4748 = vmatmul.mubr.msk.f32.gmra.mrb[10].mxu1 %vm198_vm1, %v6572_v53  ;;  %4969 = vmatmul.mubr.msk.f32.gmra.mrb[24].mxu0 %vm198_vm1, %v6573_v30  ;;  %v6166_v53 = vld [vmem:[#allocation2 + $0x189] sm:$0xff] }
 0x103   : > { %4750 = vmatprep.mubr.msk.f32.mxu1 %vm198_vm1, %v5839_v7  ;;  %4971 = vmatprep.mubr.msk.f32.mxu0 %vm198_vm1, %v6574_v3  ;;  %v3016_v7 = vld [vmem:[#allocation2 + $0x199] sm:$0xff] }
 0x106   : > { %4751 = vmatmul.mubr.msk.f32.gmra.mrb[12].mxu1 %vm198_vm1, %v6575_v37  ;;  %4972 = vmatmul.mubr.msk.f32.gmra.mrb[26].mxu0 %vm198_vm1, %v6576_v49  ;;  %v3017_v37 = vld [vmem:[#allocation2 + $0x1a1] sm:$0xff] }
 0x107   : > { %4753 = vmatprep.mubr.msk.f32.mxu1 %vm198_vm1, %v5855_v61  ;;  %4974 = vmatprep.mubr.msk.f32.mxu0 %vm198_vm1, %v6156_v34  ;;  %v3407_v61 = vld [vmem:[#allocation2 + $0x1a2] sm:$0xff] }
 0x10a   : > { %4754 = vmatmul.mubr.msk.f32.gmra.mrb[14].mxu1 %vm198_vm1, %v5867_v31  ;;  %4975 = vmatmul.mubr.msk.f32.gmra.mrb[28].mxu0 %vm198_vm1, %v6166_v53 }
 0x10b   : > { %4756 = vmatprep.mubr.msk.f32.mxu1 %vm198_vm1, %v5871_v28  ;;  %4977 = vmatprep.mubr.msk.f32.mxu0 %vm198_vm1, %v3016_v7 }
 0x10e   : > { %4757 = vmatmul.mubr.msk.f32.gmra.mrb[16].mxu1 %vm198_vm1, %v5881_v54  ;;  %4978 = vmatmul.mubr.msk.f32.gmra.mrb[30].mxu0 %vm198_vm1, %v3017_v37  ;;  %v6577_v54 = vld [vmem:[#allocation32_spill] sm:$0xff] }
 0x10f   : > { %4759 = vmatprep.mubr.msk.f32.mxu1 %vm198_vm1, %v5883_v59  ;;  %4982 = vmatprep.mubr.msk.f32.mxu0 %vm198_vm1, %v5621_v62  ;;  %v6578_v59 = vld [vmem:[#allocation33_spill] sm:$0xff] }
 0x112   : > { %4760 = vmatmul.mubr.msk.f32.gmra.mrb[18].mxu1 %vm198_vm1, %v5898_v56  ;;  %4983 = vmatmul.mubr.msk.f32.vlgmr.msra.gmra.mrb[0].mxu0 %vm198_vm1, %v5638_v1  ;;  %v3406_v56 = vld [vmem:[#allocation2 + $0x19a] sm:$0xff] }
 0x113   : > { %4762 = vmatprep.mubr.msk.f32.mxu1 %vm198_vm1, %v5902_v38  ;;  %4985 = vmatprep.mubr.msk.f32.mxu0 %vm198_vm1, %v5644_v4 }
 0x116   : > { %4763 = vmatmul.mubr.msk.f32.gmra.mrb[20].mxu1 %vm198_vm1, %v5914_v63  ;;  %4986 = vmatmul.mubr.msk.f32.gmra.mrb[2].mxu0 %vm198_vm1, %v5658_v6 }
 0x117   : > { %4765 = vmatprep.mubr.msk.f32.mxu1 %vm198_vm1, %v5916_v42  ;;  %4988 = vmatprep.mubr.msk.f32.mxu0 %vm198_vm1, %v5662_v9 }
 0x11a   : > { %4766 = vmatmul.mubr.msk.f32.gmra.mrb[22].mxu1 %vm198_vm1, %v5926_v45  ;;  %4989 = vmatmul.mubr.msk.f32.gmra.mrb[4].mxu0 %vm198_vm1, %v5674_v11 }
 0x11b   : > { %4768 = vmatprep.mubr.msk.f32.mxu1 %vm198_vm1, %v5928_v8  ;;  %4991 = vmatprep.mubr.msk.f32.mxu0 %vm198_vm1, %v5678_v13 }
 0x11e   : > { %4769 = vmatmul.mubr.msk.f32.gmra.mrb[24].mxu1 %vm198_vm1, %v5938_v58  ;;  %4992 = vmatmul.mubr.msk.f32.gmra.mrb[6].mxu0 %vm198_vm1, %v5690_v15 }
 0x11f   : > { %4771 = vmatprep.mubr.msk.f32.mxu1 %vm198_vm1, %v5940_v47  ;;  %4994 = vmatprep.mubr.msk.f32.mxu0 %vm198_vm1, %v5694_v17 }
 0x122   : > { %4772 = vmatmul.mubr.msk.f32.gmra.mrb[26].mxu1 %vm198_vm1, %v5950_v20  ;;  %4995 = vmatmul.mubr.msk.f32.gmra.mrb[8].mxu0 %vm198_vm1, %v5706_v19 }
 0x123   : > { %4774 = vmatprep.mubr.msk.f32.mxu1 %vm198_vm1, %v5952_v26  ;;  %4997 = vmatprep.mubr.msk.f32.mxu0 %vm198_vm1, %v5710_v21 }
 0x126   : > { %4775 = vmatmul.mubr.msk.f32.gmra.mrb[28].mxu1 %vm198_vm1, %v5962_v12  ;;  %4998 = vmatmul.mubr.msk.f32.gmra.mrb[10].mxu0 %vm198_vm1, %v5722_v23 }
 0x127   : > { %4777 = vmatprep.mubr.msk.f32.mxu1 %vm198_vm1, %v6022_v55  ;;  %5000 = vmatprep.mubr.msk.f32.mxu0 %vm198_vm1, %v5724_v25 }
 0x12a   : > { %4778 = vmatmul.mubr.msk.f32.gmra.mrb[30].mxu1 %vm198_vm1, %v6032_v60  ;;  %5001 = vmatmul.mubr.msk.f32.gmra.mrb[12].mxu0 %vm198_vm1, %v5733_v27  ;;  %v6320_v27 = vld [vmem:[%s6469_s3] ss:$0 sm:$0xff] }
 0x12b   : > { %4806 = vmatprep.mubr.msk.f32.mxu1 %vm198_vm1, %v6551_v36  ;;  %5003 = vmatprep.mubr.msk.f32.mxu0 %vm198_vm1, %v5737_v29 }
 0x12e   : > { %4807 = vmatmul.mubr.msk.f32.vlgmr.msra.gmra.mrb[16].mxu1 %vm198_vm1, %v6553_v41  ;;  %5004 = vmatmul.mubr.msk.f32.gmra.mrb[14].mxu0 %vm198_vm1, %v5753_v33 }
 0x12f   : > { %4809 = vmatprep.mubr.msk.f32.mxu1 %vm198_vm1, %v6555_v48  ;;  %5006 = vmatprep.mubr.msk.f32.mxu0 %vm198_vm1, %v5759_v39 }
 0x132   : > { %4810 = vmatmul.mubr.msk.f32.gmra.mrb[18].mxu1 %vm198_vm1, %v6557_v50  ;;  %5007 = vmatmul.mubr.msk.f32.gmra.mrb[16].mxu0 %vm198_vm1, %v5773_v40 }
 0x133   : > { %4812 = vmatprep.mubr.msk.f32.mxu1 %vm198_vm1, %v6559_v52  ;;  %5009 = vmatprep.mubr.msk.f32.mxu0 %vm198_vm1, %v5777_v44 }
 0x136   : > { %4813 = vmatmul.mubr.msk.f32.gmra.mrb[20].mxu1 %vm198_vm1, %v6561_v0  ;;  %5010 = vmatmul.mubr.msk.f32.gmra.mrb[18].mxu0 %vm198_vm1, %v5789_v46 }
 0x137   : > { %4815 = vmatprep.mubr.msk.f32.mxu1 %vm198_vm1, %v6563_v2  ;;  %5012 = vmatprep.mubr.msk.f32.mxu0 %vm198_vm1, %v5793_v57 }
 0x13a   : > { %4816 = vmatmul.mubr.msk.f32.gmra.mrb[22].mxu1 %vm198_vm1, %v6565_v16  ;;  %5013 = vmatmul.mubr.msk.f32.gmra.mrb[20].mxu0 %vm198_vm1, %v5805_v24 }
 0x13b   : > { %4818 = vmatprep.mubr.msk.f32.mxu1 %vm198_vm1, %v6567_v35  ;;  %5015 = vmatprep.mubr.msk.f32.mxu0 %vm198_vm1, %v5809_v22  ;;  %v6315_v22 = vld [vmem:[%s6468_s2] ss:$0 sm:$0xff] }
 0x13e   : > { %4819 = vmatmul.mubr.msk.f32.gmra.mrb[24].mxu1 %vm198_vm1, %v6569_v43  ;;  %5016 = vmatmul.mubr.msk.f32.gmra.mrb[22].mxu0 %vm198_vm1, %v5821_v18 }
 0x13f   : > { %4821 = vmatprep.mubr.msk.f32.mxu1 %vm198_vm1, %v6571_v51  ;;  %5018 = vmatprep.mubr.msk.f32.mxu0 %vm198_vm1, %v5825_v14 }
 0x142   : > { %4822 = vmatmul.mubr.msk.f32.gmra.mrb[26].mxu1 %vm198_vm1, %v6573_v30  ;;  %5019 = vmatmul.mubr.msk.f32.gmra.mrb[24].mxu0 %vm198_vm1, %v5837_v10 }
 0x143   : > { %4824 = vmatprep.mubr.msk.f32.mxu1 %vm198_vm1, %v6574_v3  ;;  %5021 = vmatprep.mubr.msk.f32.mxu0 %vm198_vm1, %v5841_v5 }
 0x146   : > { %4825 = vmatmul.mubr.msk.f32.gmra.mrb[28].mxu1 %vm198_vm1, %v6576_v49  ;;  %5022 = vmatmul.mubr.msk.f32.gmra.mrb[26].mxu0 %vm198_vm1, %v6548_v32 }
 0x147   : > { %4827 = vmatprep.mubr.msk.f32.mxu1 %vm198_vm1, %v6156_v34  ;;  %5024 = vmatprep.mubr.msk.f32.mxu0 %vm198_vm1, %v6577_v54 }
 0x14a   : > { %4828 = vmatmul.mubr.msk.f32.gmra.mrb[30].mxu1 %vm198_vm1, %v6166_v53  ;;  %5025 = vmatmul.mubr.msk.f32.gmra.mrb[28].mxu0 %vm198_vm1, %v6578_v59 }
 0x14b   : > { %5027 = vmatprep.mubr.msk.f32.mxu0 %vm198_vm1, %v3406_v56 }
 0x14e   : > { %5028 = vmatmul.mubr.msk.f32.gmra.mrb[30].mxu0 %vm198_vm1, %v3407_v61 }
 0x1c1   : > { %v4734_v62 = vpop.f32.mrb[0].mxu1 }
 0x1c2   : > { %v1624_v1 = vpop.f32.mrb[1].mxu1 }
 0x1c5   : > { %v4737_v4 = vpop.f32.mrb[2].mxu1 }
 0x1c6   : > { %v1634_v5 = vpop.f32.mrb[3].mxu1 }
 0x1c9   : > { %v4740_v6 = vpop.f32.mrb[4].mxu1 }
 0x1ca   : > { %v1644_v9 = vpop.f32.mrb[5].mxu1 }
 0x1cd   : > { %v4743_v10 = vpop.f32.mrb[6].mxu1 }
 0x1ce   : > { %v1654_v11 = vpop.f32.mrb[7].mxu1 }
 0x1d1   : > { %v4746_v12 = vpop.f32.mrb[8].mxu1 }
 0x1d2   : > { %v1664_v13 = vpop.f32.mrb[9].mxu1 }
 0x1d5   : > { %v6300_v14 = vpop.f32.mrb[10].mxu1 }
 0x1d6   : > { %v6302_v15 = vpop.f32.mrb[11].mxu1 }
 0x1d9   : > { %v6304_v17 = vpop.f32.mrb[12].mxu1 }
 0x1da   : > { %v6306_v18 = vpop.f32.mrb[13].mxu1 }
 0x1dd   : > { %v6308_v19 = vpop.f32.mrb[14].mxu1 }
 0x1de   : > { %v6310_v20 = vpop.f32.mrb[15].mxu1 }
 0x1e5   : > { %v4984_v21 = vpop.f32.mrb[0].mxu0 }
 0x1e6   : > { %v5032_v23 = vadd.f32 %v4984_v21, %v4734_v62  ;;  %v3575_v25 = vpop.f32.mrb[1].mxu0 }
 0x1e7   : > { %v5033_v28 = vadd.f32 %v3575_v25, %v1624_v1 }
 0x1e8   : > { %v3774_v29 = vmul.f32 %v5032_v23, %v6315_v22 }
 0x1e9   : > { %v3773_v31 = vmul.f32 %v5033_v28, %v6315_v22  ;;  %v4987_v33 = vpop.f32.mrb[2].mxu0 }
 0x1ea   : > { %v3813_v38 = vadd.f32 %v6320_v27, %v3774_v29  ;;  %v5034_v39 = vadd.f32 %v4987_v33, %v4737_v4  ;;  %v3585_v8 = vpop.f32.mrb[3].mxu0 }
 0x1eb   : > { %v3812_v40 = vadd.f32 %v6320_v27, %v3773_v31  ;;  %v5035_v42 = vadd.f32 %v3585_v8, %v1634_v5 }
 0x1ec   : > { %v3845_v44 = vmax.f32 %v3813_v38, 0.0  ;;  %v3776_v45 = vmul.f32 %v5034_v39, %v6315_v22 }
 0x1ed   : > { %v3844_v46 = vmax.f32 %v3812_v40, 0.0  ;;  %v3775_v47 = vmul.f32 %v5035_v42, %v6315_v22  ;;  %v4990_v57 = vpop.f32.mrb[4].mxu0 }
 0x1ee   : > { %3877 = vst.msk [vmem:[%s6330_s21 + $0x8] sm:$0xff] %vm198_vm1, %v3845_v44  ;;  %v3815_v58 = vadd.f32 %v6320_v27, %v3776_v45  ;;  %v5036_v24 = vadd.f32 %v4990_v57, %v4740_v6  ;;  %v3595_v26 = vpop.f32.mrb[5].mxu0 }
 0x1ef   : > { %3876 = vst.msk [vmem:[%s6330_s21] sm:$0xff] %vm198_vm1, %v3844_v46  ;;  %v3814_v63 = vadd.f32 %v6320_v27, %v3775_v47  ;;  %v5037_v55 = vadd.f32 %v3595_v26, %v1644_v9 }
 0x1f0   : > { %v3847_v60 = vmax.f32 %v3815_v58, 0.0  ;;  %v3778_v32 = vmul.f32 %v5036_v24, %v6315_v22 }
 0x1f1   : > { %v3846_v36 = vmax.f32 %v3814_v63, 0.0  ;;  %v3777_v41 = vmul.f32 %v5037_v55, %v6315_v22  ;;  %v4993_v48 = vpop.f32.mrb[6].mxu0 }
 0x1f2   : > { %3879 = vst.msk [vmem:[%s6330_s21 + $0x18] sm:$0xff] %vm198_vm1, %v3847_v60  ;;  %v3817_v50 = vadd.f32 %v6320_v27, %v3778_v32  ;;  %v5038_v52 = vadd.f32 %v4993_v48, %v4743_v10  ;;  %v3605_v0 = vpop.f32.mrb[7].mxu0 }
 0x1f3   : > { %3878 = vst.msk [vmem:[%s6330_s21 + $0x10] sm:$0xff] %vm198_vm1, %v3846_v36  ;;  %v3816_v2 = vadd.f32 %v6320_v27, %v3777_v41  ;;  %v5039_v16 = vadd.f32 %v3605_v0, %v1654_v11 }
 0x1f4   : > { %v3849_v35 = vmax.f32 %v3817_v50, 0.0  ;;  %v3780_v43 = vmul.f32 %v5038_v52, %v6315_v22 }
 0x1f5   : > { %v3848_v51 = vmax.f32 %v3816_v2, 0.0  ;;  %v3779_v30 = vmul.f32 %v5039_v16, %v6315_v22  ;;  %v4996_v3 = vpop.f32.mrb[8].mxu0 }
 0x1f6   : > { %3881 = vst.msk [vmem:[%s6330_s21 + $0x28] sm:$0xff] %vm198_vm1, %v3849_v35  ;;  %v3819_v34 = vadd.f32 %v6320_v27, %v3780_v43  ;;  %v5040_v49 = vadd.f32 %v4996_v3, %v4746_v12  ;;  %v3615_v53 = vpop.f32.mrb[9].mxu0 }
 0x1f7   : > { %3880 = vst.msk [vmem:[%s6330_s21 + $0x20] sm:$0xff] %vm198_vm1, %v3848_v51  ;;  %v3818_v7 = vadd.f32 %v6320_v27, %v3779_v30  ;;  %v5041_v37 = vadd.f32 %v3615_v53, %v1664_v13 }
 0x1f8   : > { %v3851_v54 = vmax.f32 %v3819_v34, 0.0  ;;  %v3782_v56 = vmul.f32 %v5040_v49, %v6315_v22 }
 0x1f9   : > { %v3850_v59 = vmax.f32 %v3818_v7, 0.0  ;;  %v3781_v61 = vmul.f32 %v5041_v37, %v6315_v22  ;;  %v4999_v62 = vpop.f32.mrb[10].mxu0 }
 0x1fa   : > { %3883 = vst.msk [vmem:[%s6330_s21 + $0x38] sm:$0xff] %vm198_vm1, %v3851_v54  ;;  %v3821_v1 = vadd.f32 %v6320_v27, %v3782_v56  ;;  %v5042_v4 = vadd.f32 %v4999_v62, %v6300_v14  ;;  %v3625_v5 = vpop.f32.mrb[11].mxu0 }
 0x1fb   : > { %3882 = vst.msk [vmem:[%s6330_s21 + $0x30] sm:$0xff] %vm198_vm1, %v3850_v59  ;;  %v3820_v6 = vadd.f32 %v6320_v27, %v3781_v61  ;;  %v5043_v9 = vadd.f32 %v3625_v5, %v6302_v15 }
 0x1fc   : > { %v3853_v10 = vmax.f32 %v3821_v1, 0.0  ;;  %v3784_v11 = vmul.f32 %v5042_v4, %v6315_v22 }
 0x1fd   : > { %v3852_v12 = vmax.f32 %v3820_v6, 0.0  ;;  %v3783_v13 = vmul.f32 %v5043_v9, %v6315_v22  ;;  %v5002_v21 = vpop.f32.mrb[12].mxu0 }
 0x1fe   : > { %3885 = vst.msk [vmem:[%s6330_s21 + $0x48] sm:$0xff] %vm198_vm1, %v3853_v10  ;;  %v3823_v23 = vadd.f32 %v6320_v27, %v3784_v11  ;;  %v5044_v14 = vadd.f32 %v5002_v21, %v6304_v17  ;;  %v3635_v25 = vpop.f32.mrb[13].mxu0 }
 0x1ff   : > { %3884 = vst.msk [vmem:[%s6330_s21 + $0x40] sm:$0xff] %vm198_vm1, %v3852_v12  ;;  %v3822_v15 = vadd.f32 %v6320_v27, %v3783_v13  ;;  %v5045_v28 = vadd.f32 %v3635_v25, %v6306_v18 }
 0x200   : > { %v3855_v29 = vmax.f32 %v3823_v23, 0.0  ;;  %v3786_v31 = vmul.f32 %v5044_v14, %v6315_v22 }
 0x201   : > { %v3854_v33 = vmax.f32 %v3822_v15, 0.0  ;;  %v3785_v38 = vmul.f32 %v5045_v28, %v6315_v22  ;;  %v4808_v39 = vpop.f32.mrb[16].mxu1  ;;  %v5005_v8 = vpop.f32.mrb[14].mxu0 }
 0x202   : > { %3887 = vst.msk [vmem:[%s6330_s21 + $0x58] sm:$0xff] %vm198_vm1, %v3855_v29  ;;  %v3825_v17 = vadd.f32 %v6320_v27, %v3786_v31  ;;  %v5046_v40 = vadd.f32 %v5005_v8, %v6308_v19  ;;  %v2094_v42 = vpop.f32.mrb[17].mxu1  ;;  %v3645_v44 = vpop.f32.mrb[15].mxu0 }
 0x203   : > { %3886 = vst.msk [vmem:[%s6330_s21 + $0x50] sm:$0xff] %vm198_vm1, %v3854_v33  ;;  %v3824_v18 = vadd.f32 %v6320_v27, %v3785_v38  ;;  %v5047_v45 = vadd.f32 %v3645_v44, %v6310_v20 }
 0x204   : > { %v3857_v46 = vmax.f32 %v3825_v17, 0.0  ;;  %v3788_v47 = vmul.f32 %v5046_v40, %v6315_v22 }
 0x205   : > { %v3856_v57 = vmax.f32 %v3824_v18, 0.0  ;;  %v3787_v58 = vmul.f32 %v5047_v45, %v6315_v22  ;;  %v4811_v24 = vpop.f32.mrb[18].mxu1  ;;  %v5008_v26 = vpop.f32.mrb[16].mxu0 }
 0x206   : > { %3889 = vst.msk [vmem:[%s6330_s21 + $0x68] sm:$0xff] %vm198_vm1, %v3857_v46  ;;  %v3827_v19 = vadd.f32 %v6320_v27, %v3788_v47  ;;  %v5048_v63 = vadd.f32 %v5008_v26, %v4808_v39  ;;  %v2104_v55 = vpop.f32.mrb[19].mxu1  ;;  %v3655_v60 = vpop.f32.mrb[17].mxu0 }
 0x207   : > { %3888 = vst.msk [vmem:[%s6330_s21 + $0x60] sm:$0xff] %vm198_vm1, %v3856_v57  ;;  %v3826_v20 = vadd.f32 %v6320_v27, %v3787_v58  ;;  %v5049_v32 = vadd.f32 %v3655_v60, %v2094_v42 }
 0x208   : > { %v3859_v36 = vmax.f32 %v3827_v19, 0.0  ;;  %v3790_v41 = vmul.f32 %v5048_v63, %v6315_v22 }
 0x209   : > { %v3858_v48 = vmax.f32 %v3826_v20, 0.0  ;;  %v3789_v50 = vmul.f32 %v5049_v32, %v6315_v22  ;;  %v4814_v52 = vpop.f32.mrb[20].mxu1  ;;  %v5011_v0 = vpop.f32.mrb[18].mxu0 }
 0x20a   : > { %3891 = vst.msk [vmem:[%s6330_s21 + $0x78] sm:$0xff] %vm198_vm1, %v3859_v36  ;;  %v3829_v2 = vadd.f32 %v6320_v27, %v3790_v41  ;;  %v5050_v16 = vadd.f32 %v5011_v0, %v4811_v24  ;;  %v2114_v35 = vpop.f32.mrb[21].mxu1  ;;  %v3665_v43 = vpop.f32.mrb[19].mxu0 }
 0x20b   : > { %3890 = vst.msk [vmem:[%s6330_s21 + $0x70] sm:$0xff] %vm198_vm1, %v3858_v48  ;;  %v3828_v51 = vadd.f32 %v6320_v27, %v3789_v50  ;;  %v5051_v30 = vadd.f32 %v3665_v43, %v2104_v55 }
 0x20c   : > { %v3861_v3 = vmax.f32 %v3829_v2, 0.0  ;;  %v3792_v34 = vmul.f32 %v5050_v16, %v6315_v22 }
 0x20d   : > { %v3860_v49 = vmax.f32 %v3828_v51, 0.0  ;;  %v3791_v53 = vmul.f32 %v5051_v30, %v6315_v22  ;;  %v4817_v7 = vpop.f32.mrb[22].mxu1  ;;  %v5014_v37 = vpop.f32.mrb[20].mxu0 }
 0x20e   : > { %3893 = vst.msk [vmem:[%s6330_s21 + $0x88] sm:$0xff] %vm198_vm1, %v3861_v3  ;;  %v3831_v54 = vadd.f32 %v6320_v27, %v3792_v34  ;;  %v5052_v56 = vadd.f32 %v5014_v37, %v4814_v52  ;;  %v2124_v59 = vpop.f32.mrb[23].mxu1  ;;  %v3675_v61 = vpop.f32.mrb[21].mxu0 }
 0x20f   : > { %3892 = vst.msk [vmem:[%s6330_s21 + $0x80] sm:$0xff] %vm198_vm1, %v3860_v49  ;;  %v3830_v62 = vadd.f32 %v6320_v27, %v3791_v53  ;;  %v5053_v1 = vadd.f32 %v3675_v61, %v2114_v35 }
 0x210   : > { %v3863_v4 = vmax.f32 %v3831_v54, 0.0  ;;  %v3794_v5 = vmul.f32 %v5052_v56, %v6315_v22 }
 0x211   : > { %v3862_v6 = vmax.f32 %v3830_v62, 0.0  ;;  %v3793_v9 = vmul.f32 %v5053_v1, %v6315_v22  ;;  %v4820_v10 = vpop.f32.mrb[24].mxu1  ;;  %v5017_v11 = vpop.f32.mrb[22].mxu0 }
 0x212   : > { %3895 = vst.msk [vmem:[%s6330_s21 + $0x98] sm:$0xff] %vm198_vm1, %v3863_v4  ;;  %v3833_v12 = vadd.f32 %v6320_v27, %v3794_v5  ;;  %v5054_v13 = vadd.f32 %v5017_v11, %v4817_v7  ;;  %v2134_v21 = vpop.f32.mrb[25].mxu1  ;;  %v3685_v23 = vpop.f32.mrb[23].mxu0 }
 0x213   : > { %3894 = vst.msk [vmem:[%s6330_s21 + $0x90] sm:$0xff] %vm198_vm1, %v3862_v6  ;;  %v3832_v14 = vadd.f32 %v6320_v27, %v3793_v9  ;;  %v5055_v25 = vadd.f32 %v3685_v23, %v2124_v59 }
 0x214   : > { %v3865_v15 = vmax.f32 %v3833_v12, 0.0  ;;  %v3796_v28 = vmul.f32 %v5054_v13, %v6315_v22 }
 0x215   : > { %v3864_v29 = vmax.f32 %v3832_v14, 0.0  ;;  %v3795_v31 = vmul.f32 %v5055_v25, %v6315_v22  ;;  %v4823_v33 = vpop.f32.mrb[26].mxu1  ;;  %v5020_v38 = vpop.f32.mrb[24].mxu0 }
 0x216   : > { %3897 = vst.msk [vmem:[%s6330_s21 + $0xa8] sm:$0xff] %vm198_vm1, %v3865_v15  ;;  %v3835_v39 = vadd.f32 %v6320_v27, %v3796_v28  ;;  %v5056_v8 = vadd.f32 %v5020_v38, %v4820_v10  ;;  %v2144_v17 = vpop.f32.mrb[27].mxu1  ;;  %v3695_v40 = vpop.f32.mrb[25].mxu0 }
 0x217   : > { %3896 = vst.msk [vmem:[%s6330_s21 + $0xa0] sm:$0xff] %vm198_vm1, %v3864_v29  ;;  %v3834_v42 = vadd.f32 %v6320_v27, %v3795_v31  ;;  %v5057_v44 = vadd.f32 %v3695_v40, %v2134_v21 }
 0x218   : > { %v3867_v18 = vmax.f32 %v3835_v39, 0.0  ;;  %v3798_v45 = vmul.f32 %v5056_v8, %v6315_v22 }
 0x219   : > { %v3866_v46 = vmax.f32 %v3834_v42, 0.0  ;;  %v3797_v47 = vmul.f32 %v5057_v44, %v6315_v22  ;;  %v4826_v57 = vpop.f32.mrb[28].mxu1  ;;  %v5023_v58 = vpop.f32.mrb[26].mxu0 }
 0x21a   : > { %3899 = vst.msk [vmem:[%s6330_s21 + $0xb8] sm:$0xff] %vm198_vm1, %v3867_v18  ;;  %v3837_v24 = vadd.f32 %v6320_v27, %v3798_v45  ;;  %v5058_v26 = vadd.f32 %v5023_v58, %v4823_v33  ;;  %v2154_v19 = vpop.f32.mrb[29].mxu1  ;;  %v3705_v63 = vpop.f32.mrb[27].mxu0 }
 0x21b   : > { %3898 = vst.msk [vmem:[%s6330_s21 + $0xb0] sm:$0xff] %vm198_vm1, %v3866_v46  ;;  %v3836_v55 = vadd.f32 %v6320_v27, %v3797_v47  ;;  %v5059_v60 = vadd.f32 %v3705_v63, %v2144_v17 }
 0x21c   : > { %v3869_v20 = vmax.f32 %v3837_v24, 0.0  ;;  %v3800_v32 = vmul.f32 %v5058_v26, %v6315_v22 }
 0x21d   : > { %v3868_v36 = vmax.f32 %v3836_v55, 0.0  ;;  %v3799_v41 = vmul.f32 %v5059_v60, %v6315_v22  ;;  %v4829_v48 = vpop.f32.mrb[30].mxu1  ;;  %v5026_v50 = vpop.f32.mrb[28].mxu0 }
 0x21e   : > { %3901 = vst.msk [vmem:[%s6330_s21 + $0xc8] sm:$0xff] %vm198_vm1, %v3869_v20  ;;  %v3839_v52 = vadd.f32 %v6320_v27, %v3800_v32  ;;  %v5060_v0 = vadd.f32 %v5026_v50, %v4826_v57  ;;  %v2164_v2 = vpop.f32.mrb[31].mxu1  ;;  %v3715_v16 = vpop.f32.mrb[29].mxu0 }
 0x21f   : > { %3900 = vst.msk [vmem:[%s6330_s21 + $0xc0] sm:$0xff] %vm198_vm1, %v3868_v36  ;;  %v3838_v35 = vadd.f32 %v6320_v27, %v3799_v41  ;;  %v5061_v43 = vadd.f32 %v3715_v16, %v2154_v19 }
 0x220   : > { %v3871_v51 = vmax.f32 %v3839_v52, 0.0  ;;  %v3802_v30 = vmul.f32 %v5060_v0, %v6315_v22 }
 0x221   : > { %v3870_v3 = vmax.f32 %v3838_v35, 0.0  ;;  %v3801_v34 = vmul.f32 %v5061_v43, %v6315_v22  ;;  %v5029_v49 = vpop.f32.mrb[30].mxu0 }
 0x222   : > { %3903 = vst.msk [vmem:[%s6330_s21 + $0xd8] sm:$0xff] %vm198_vm1, %v3871_v51  ;;  %v3841_v53 = vadd.f32 %v6320_v27, %v3802_v30  ;;  %v5062_v7 = vadd.f32 %v5029_v49, %v4829_v48  ;;  %v3725_v37 = vpop.f32.mrb[31].mxu0 }
 0x223   : > { %3902 = vst.msk [vmem:[%s6330_s21 + $0xd0] sm:$0xff] %vm198_vm1, %v3870_v3  ;;  %v3840_v54 = vadd.f32 %v6320_v27, %v3801_v34  ;;  %v5063_v56 = vadd.f32 %v3725_v37, %v2164_v2 }
 0x224   : > { %v3873_v59 = vmax.f32 %v3841_v53, 0.0  ;;  %v3804_v61 = vmul.f32 %v5062_v7, %v6315_v22 }
 0x225   : > { %v3872_v62 = vmax.f32 %v3840_v54, 0.0  ;;  %v3803_v1 = vmul.f32 %v5063_v56, %v6315_v22 }
 0x226   : > { %3905 = vst.msk [vmem:[%s6330_s21 + $0xe8] sm:$0xff] %vm198_vm1, %v3873_v59  ;;  %v3843_v4 = vadd.f32 %v6320_v27, %v3804_v61 }
 0x227   : > { %3904 = vst.msk [vmem:[%s6330_s21 + $0xe0] sm:$0xff] %vm198_vm1, %v3872_v62  ;;  %v3842_v5 = vadd.f32 %v6320_v27, %v3803_v1 }
 0x228   : > { %v3875_v6 = vmax.f32 %v3843_v4, 0.0 }
 0x229   : > { %v3874_v9 = vmax.f32 %v3842_v5, 0.0 }
 0x22a   : > { %3907 = vst.msk [vmem:[%s6330_s21 + $0xf8] sm:$0xff] %vm198_vm1, %v3875_v6 }
 0x22b   : > { %3906 = vst.msk [vmem:[%s6330_s21 + $0xf0] sm:$0xff] %vm198_vm1, %v3874_v9 }
 0x22c PF: > { %s14_s15 = sadd.s32 1, %s5303_s15  }
 0x22d   : > { %p11_p4 = scmp.ge.s32.totalorder %s14_s15, 4  }
 0x22f   :  { %13 = sbr.rel (!%p11_p4) target bundleno = 1 (0x1), region = 76 }

</bundles_post_ra>
